<compile_context>
chip_gen: v7x
topology: tpu7x:2x2x1
jax: 0.10.0
libtpu: 0.0.40
codegen_flags: <defaults>
</compile_context>

<pallas_src>
import functools

import numpy as np
import jax
import jax.numpy as jnp
from jax import lax
from jax.experimental import pallas as pl
from jax.experimental.pallas import tpu as pltpu

jax.config.update("jax_default_matmul_precision", "float32")

NEG_BIG = -1e30  # masks padded vocab columns in log_softmax


def _vmem_spec():
    return pl.BlockSpec(memory_space=pltpu.MemorySpace.VMEM)


# ---------------------------------------------------------------------------
# Fused kernel: history fc_attn -> GRU -> dot attention -> fc_final+log_softmax
# ---------------------------------------------------------------------------
def fused_kernel(T, H, target_len,
                 x_ref, hist_ref, wa_ref, wi_ref, wh_ref, wf_ref,
                 bias_ref, bf_ref, out_ref):
    f32 = jnp.float32

    gi_bias = bias_ref[0:1, :]        # (1, 3H) = b_ih + [b_hh_r | b_hh_z | 0]
    bhn = bias_ref[1:2, 0:H]          # (1, H)  = b_hh_n (stays inside r*(...))
    ba = bias_ref[2:3, 0:H]           # (1, H)  = fc_attn bias

    # ---- history: pre-aggregated embeddings, project + tanh ----------------
    history = jnp.tanh(
        jnp.dot(hist_ref[...], wa_ref[...], preferred_element_type=f32) + ba
    )                                                           # (n_hist, H)

    # ---- GRU: single packed input-side matmul, biases folded ---------------
    x = x_ref[...]                                              # (T, I)
    gi = jnp.dot(x, wi_ref[...], preferred_element_type=f32) + gi_bias  # (T, 3H)

    wh = wh_ref[...]                                            # (H, 3H)
    h = jnp.zeros((1, H), f32)
    tail = []
    for t in range(T):  # fully unrolled (small static T)
        gh = jnp.dot(h, wh, preferred_element_type=f32)         # (1, 3H)
        r = jax.nn.sigmoid(gi[t:t + 1, 0:H] + gh[:, 0:H])
        z = jax.nn.sigmoid(gi[t:t + 1, H:2 * H] + gh[:, H:2 * H])
        n = jnp.tanh(gi[t:t + 1, 2 * H:3 * H] + r * (gh[:, 2 * H:3 * H] + bhn))
        h = (1.0 - z) * n + z * h
        if t >= T - target_len:            # only keep what downstream uses
            tail.append(h)
    out_tail = jnp.concatenate(tail, axis=0)                    # (tgt, H)

    # ---- dot attention over history + context -------------------------------
    scores = lax.dot_general(out_tail, history, (((1,), (1,)), ((), ())),
                             preferred_element_type=f32)        # (tgt, n_hist)
    m = jnp.max(scores, axis=-1, keepdims=True)
    e = jnp.exp(scores - m)
    attn_w = e / jnp.sum(e, axis=-1, keepdims=True)
    context = jnp.dot(attn_w, history, preferred_element_type=f32)  # (tgt, H)

    # ---- fc_final (packed [hidden; context] weight, uid folded into bias) --
    wf = wf_ref[...]                                            # (2H, Vp)
    y = (jnp.dot(out_tail, wf[0:H, :], preferred_element_type=f32)
         + jnp.dot(context, wf[H:2 * H, :], preferred_element_type=f32)
         + bf_ref[...])                                         # (tgt, Vp)

    # log_softmax over lane-dense padded vocab (padded cols carry -1e30 bias)
    ym = jnp.max(y, axis=-1, keepdims=True)
    lse = jnp.log(jnp.sum(jnp.exp(y - ym), axis=-1, keepdims=True)) + ym
    out_ref[...] = y - lse


# ---------------------------------------------------------------------------
# One-time parameter prep: pack / transpose / pad weights, segment helpers.
# ---------------------------------------------------------------------------
def prepare_kernel_params(params, history_count):
    H = params["w_hh"].shape[1]
    V = params["fc_final_w"].shape[0]
    Vp = max(128, int(np.ceil(V / 128)) * 128)
    pad = Vp - V

    w_ih, w_hh = params["w_ih"], params["w_hh"]            # (3H, I), (3H, H)
    b_ih, b_hh = params["b_ih"], params["b_hh"]            # (3H,)

    # packed GRU weights: gates along the output (lane) axis in [r | z | n]
    wi = jnp.asarray(w_ih.T)                               # (I, 3H)
    wh = jnp.asarray(w_hh.T)                               # (H, 3H)

    # bias bundle (3, 3H):
    #   row 0: b_ih + [b_hh_r | b_hh_z | 0]   (folded into gi outside the loop)
    #   row 1: [b_hh_n | 0 | 0]               (must stay inside r*(...))
    #   row 2: [fc_attn_b | 0 | 0]
    gi_bias = b_ih + jnp.concatenate(
        [b_hh[:2 * H], jnp.zeros((H,), jnp.float32)])
    biases = jnp.zeros((3, 3 * H), jnp.float32)
    biases = biases.at[0, :].set(gi_bias)
    biases = biases.at[1, :H].set(b_hh[2 * H:])
    biases = biases.at[2, :H].set(params["fc_attn_b"])

    # fc_attn weight, transposed (in, out)
    wa = jnp.asarray(params["fc_attn_w"].T)                # (I, H)

    # fc_final weight split: [hidden|context] packed, uid part kept wrapper-side
    ff_w = params["fc_final_w"]                            # (V, 2H+uid)
    wf = jnp.pad(ff_w[:, :2 * H].T, ((0, 0), (0, pad)))    # (2H, Vp)
    wf_u = jnp.pad(ff_w[:, 2 * H:].T, ((0, 0), (0, pad)))  # (uid_emb, Vp)
    bf = jnp.pad(params["fc_final_b"], (0, pad),
                 constant_values=NEG_BIG).reshape(1, Vp)

    # segment-mean matrix and first-index gather (history_count is static)
    n_hist = len(history_count)
    L = int(sum(history_count))
    seg_mean = np.zeros((n_hist, L), np.float32)
    first_idx = np.zeros((n_hist,), np.int32)
    off = 0
    for i, c in enumerate(history_count):
        seg_mean[i, off:off + c] = 1.0 / c
        first_idx[i] = off
        off += c

    return dict(
        H=H, V=V, Vp=Vp,
        wa=wa, wi=wi, wh=wh, wf=wf, wf_u=wf_u, bf=bf, biases=biases,
        seg_mean=jnp.asarray(seg_mean), first_idx=jnp.asarray(first_idx),
    )


# ---------------------------------------------------------------------------
# Forward pass: embedding gathers + tiny aggregations in plain JAX,
# everything else in one fused kernel (8 packed inputs).
# ---------------------------------------------------------------------------
def traj_pre_attn_avg_long_user_forward(params, kparams, loc, tim,
                                        history_loc, history_tim, uid,
                                        target_len):
    f32 = jnp.float32
    x = jnp.concatenate([params["emb_loc"][loc], params["emb_tim"][tim]],
                        axis=1).astype(f32)                       # (T, I)

    # aggregate-then-project re-association (embedding space, tiny)
    hist_loc_emb = params["emb_loc"][history_loc].astype(f32)     # (L, loc_emb)
    hist_tim_emb = params["emb_tim"][history_tim].astype(f32)     # (L, tim_emb)
    agg_loc = kparams["seg_mean"] @ hist_loc_emb                  # (n_hist, loc_emb)
    agg_tim = hist_tim_emb[kparams["first_idx"]]                  # (n_hist, tim_emb)
    hist_agg = jnp.concatenate([agg_loc, agg_tim], axis=1)        # (n_hist, I)

    # fold uid contribution into the fc_final bias (removes wf_u from kernel)
    uid_emb = params["emb_uid"][uid].astype(f32)                  # (1, uid_emb)
    bf_eff = kparams["bf"] + uid_emb @ kparams["wf_u"]            # (1, Vp)

    T, I = x.shape
    n_hist = hist_agg.shape[0]
    H, V, Vp = kparams["H"], kparams["V"], kparams["Vp"]

    inputs = (x, hist_agg, kparams["wa"], kparams["wi"], kparams["wh"],
              kparams["wf"], kparams["biases"], bf_eff)
    total_bytes = sum(int(np.prod(a.shape)) * 4 for a in inputs) \
        + target_len * Vp * 4
    vmem_limit = max(16 << 20, 2 * total_bytes + (1 << 20))

    flops = 2 * (n_hist * I * H          # history projection
                 + T * I * 3 * H         # packed input-side GRU matmul
                 + T * H * 3 * H         # packed hidden-side GRU recurrence
                 + 2 * target_len * n_hist * H   # scores + context
                 + target_len * 2 * H * Vp)      # fc_final
    transcendentals = (n_hist * H + T * 3 * H
                       + target_len * (n_hist + Vp))

    kernel = functools.partial(fused_kernel, T, H, target_len)
    score_pad = pl.pallas_call(
        kernel,
        out_shape=jax.ShapeDtypeStruct((target_len, Vp), jnp.float32),
        in_specs=[_vmem_spec() for _ in inputs],
        out_specs=_vmem_spec(),
        compiler_params=pltpu.CompilerParams(vmem_limit_bytes=vmem_limit),
        cost_estimate=pl.CostEstimate(flops=flops,
                                      transcendentals=transcendentals,
                                      bytes_accessed=total_bytes),
    )(*inputs)
    return score_pad[:, :V]


# ---------------------------------------------------------------------------
# Pure-JAX reference (mirrors the torch module) for correctness checking.
# ---------------------------------------------------------------------------
def _ref_forward(params, loc, tim, history_loc, history_tim, history_count,
                 uid, target_len):
    H = params["w_hh"].shape[1]
    x = jnp.concatenate([params["emb_loc"][loc], params["emb_tim"][tim]], axis=1)
    hl = params["emb_loc"][history_loc]
    ht = params["emb_tim"][history_tim]
    rows_l, rows_t, cnt = [], [], 0
    for c in history_count:
        rows_l.append(jnp.mean(hl[cnt:cnt + c], axis=0, keepdims=True))
        rows_t.append(ht[cnt:cnt + 1])
        cnt += c
    history = jnp.concatenate(
        [jnp.concatenate(rows_l, 0), jnp.concatenate(rows_t, 0)], axis=1)
    history = jnp.tanh(history @ params["fc_attn_w"].T + params["fc_attn_b"])

    w_ih, w_hh = params["w_ih"], params["w_hh"]
    b_ih, b_hh = params["b_ih"], params["b_hh"]
    h = jnp.zeros((1, H), jnp.float32)
    outs = []
    for t in range(x.shape[0]):
        gi = x[t:t + 1] @ w_ih.T + b_ih
        gh = h @ w_hh.T + b_hh
        i_r, i_z, i_n = gi[:, :H], gi[:, H:2 * H], gi[:, 2 * H:]
        h_r, h_z, h_n = gh[:, :H], gh[:, H:2 * H], gh[:, 2 * H:]
        r = jax.nn.sigmoid(i_r + h_r)
        z = jax.nn.sigmoid(i_z + h_z)
        n = jnp.tanh(i_n + r * h_n)
        h = (1.0 - z) * n + z * h
        outs.append(h)
    out_state = jnp.concatenate(outs, 0)
    out_tail = out_state[-target_len:]
    scores = out_tail @ history.T
    attn_w = jax.nn.softmax(scores, axis=-1)
    context = attn_w @ history
    uid_emb = jnp.tile(params["emb_uid"][uid], (target_len, 1))
    out = jnp.concatenate([out_tail, context, uid_emb], axis=1)
    y = out @ params["fc_final_w"].T + params["fc_final_b"]
    return jax.nn.log_softmax(y, axis=-1)


# ---------------------------------------------------------------------------
# Deterministic parameter construction (shapes follow the module __init__).
# ---------------------------------------------------------------------------
def make_params(key, loc_size, loc_emb, tim_size, tim_emb, uid_size, uid_emb,
                hidden):
    input_size = loc_emb + tim_emb
    ks = jax.random.split(key, 8)

    def xavier(k, shape):
        fan_out, fan_in = shape
        bound = jnp.sqrt(6.0 / (fan_in + fan_out))
        return jax.random.uniform(k, shape, jnp.float32, -bound, bound)

    def orthogonal(k, shape):
        a = jax.random.normal(k, shape, jnp.float32)
        q, _ = jnp.linalg.qr(a.T if shape[0] < shape[1] else a)
        q = q.T if shape[0] < shape[1] else q
        return q[: shape[0], : shape[1]].astype(jnp.float32)

    return {
        "emb_loc": jax.random.normal(ks[0], (loc_size, loc_emb), jnp.float32),
        "emb_tim": jax.random.normal(ks[1], (tim_size, tim_emb), jnp.float32),
        "emb_uid": jax.random.normal(ks[2], (uid_size, uid_emb), jnp.float32),
        "fc_attn_w": xavier(ks[3], (hidden, input_size)),
        "fc_attn_b": jnp.zeros((hidden,), jnp.float32),
        "w_ih": xavier(ks[4], (3 * hidden, input_size)),
        "w_hh": orthogonal(ks[5], (3 * hidden, hidden)),
        "b_ih": jnp.zeros((3 * hidden,), jnp.float32),
        "b_hh": jnp.zeros((3 * hidden,), jnp.float32),
        "fc_final_w": xavier(ks[6], (loc_size, 2 * hidden + uid_emb)),
        "fc_final_b": jnp.zeros((loc_size,), jnp.float32),
    }


if __name__ == "__main__":
    # small, forward-consistent sizes
    loc_size, loc_emb = 64, 16
    tim_size, tim_emb = 24, 16
    uid_size, uid_emb = 10, 8
    hidden = 32
    seq_len = 8
    target_len = 3
    history_count = [2, 1, 3, 2]            # static python list, L = 8
    L = sum(history_count)

    key = jax.random.PRNGKey(0)
    kp, k1, k2, k3, k4, k5 = jax.random.split(key, 6)

    params = make_params(kp, loc_size, loc_emb, tim_size, tim_emb,
                         uid_size, uid_emb, hidden)
    kparams = prepare_kernel_params(params, history_count)

    loc = jax.random.randint(k1, (seq_len,), 0, loc_size)
    tim = jax.random.randint(k2, (seq_len,), 0, tim_size)
    history_loc = jax.random.randint(k3, (L,), 0, loc_size)
    history_tim = jax.random.randint(k4, (L,), 0, tim_size)
    uid = jax.random.randint(k5, (1,), 0, uid_size)

    score = traj_pre_attn_avg_long_user_forward(
        params, kparams, loc, tim, history_loc, history_tim, uid, target_len)
    score = jax.block_until_ready(score)

    assert score.shape == (target_len, loc_size), score.shape
    # each row of log_softmax output should exp-sum to 1
    assert jnp.allclose(jnp.sum(jnp.exp(score), axis=1), 1.0, atol=1e-3)

    # compare with a pure-JAX reference of the torch module (tight f32 tol)
    ref = _ref_forward(params, loc, tim, history_loc, history_tim,
                       history_count, uid, target_len)
    assert jnp.allclose(score, ref, atol=1e-4, rtol=1e-4), \
        float(jnp.max(jnp.abs(score - ref)))

    print("KERNEL_OK")
</pallas_src>

<mosaic_0001>
module attributes {stable_mosaic.version = 11 : i64} {
  func.func @fused_kernel(%arg0: memref<8x32xf32, #tpu.memory_space<vmem>>, %arg1: memref<4x32xf32, #tpu.memory_space<vmem>>, %arg2: memref<32x32xf32, #tpu.memory_space<vmem>>, %arg3: memref<32x96xf32, #tpu.memory_space<vmem>>, %arg4: memref<32x96xf32, #tpu.memory_space<vmem>>, %arg5: memref<64x128xf32, #tpu.memory_space<vmem>>, %arg6: memref<3x96xf32, #tpu.memory_space<vmem>>, %arg7: memref<1x128xf32, #tpu.memory_space<vmem>>, %arg8: memref<3x128xf32, #tpu.memory_space<vmem>>) attributes {dimension_semantics = [], scalar_prefetch = 0 : i64, scratch_operands = 0 : i64, tpu.core_type = #tpu.core_type<tc>} {
    %c0 = arith.constant 0 : index
    %c0_0 = arith.constant 0 : index
    %0 = vector.load %arg6[%c0, %c0_0] : memref<3x96xf32, #tpu.memory_space<vmem>>, vector<1x96xf32>
    %c1 = arith.constant 1 : index
    %c0_1 = arith.constant 0 : index
    %1 = vector.load %arg6[%c1, %c0_1] : memref<3x96xf32, #tpu.memory_space<vmem>>, vector<1x32xf32>
    %c2 = arith.constant 2 : index
    %c0_2 = arith.constant 0 : index
    %2 = vector.load %arg6[%c2, %c0_2] : memref<3x96xf32, #tpu.memory_space<vmem>>, vector<1x32xf32>
    %c0_3 = arith.constant 0 : index
    %c0_4 = arith.constant 0 : index
    %3 = vector.load %arg1[%c0_3, %c0_4] : memref<4x32xf32, #tpu.memory_space<vmem>>, vector<4x32xf32>
    %c0_5 = arith.constant 0 : index
    %c0_6 = arith.constant 0 : index
    %4 = vector.load %arg2[%c0_5, %c0_6] : memref<32x32xf32, #tpu.memory_space<vmem>>, vector<32x32xf32>
    %cst = arith.constant dense<0.000000e+00> : vector<4x32xf32>
    %5 = tpu.matmul %3, %4, %cst {dimension_numbers = #tpu.dot_dimension_numbers<[1], [0], [0], [1], [0, 0, 1, 1], [], []>, precision = #tpu.contract_precision<fp32>} : vector<4x32xf32>, vector<32x32xf32>, vector<4x32xf32> -> vector<4x32xf32>
    %6 = vector.broadcast %2 : vector<1x32xf32> to vector<4x32xf32>
    %7 = arith.addf %5, %6 : vector<4x32xf32>
    %8 = math.tanh %7 : vector<4x32xf32>
    %c0_7 = arith.constant 0 : index
    %c0_8 = arith.constant 0 : index
    %9 = vector.load %arg0[%c0_7, %c0_8] : memref<8x32xf32, #tpu.memory_space<vmem>>, vector<8x32xf32>
    %c0_9 = arith.constant 0 : index
    %c0_10 = arith.constant 0 : index
    %10 = vector.load %arg3[%c0_9, %c0_10] : memref<32x96xf32, #tpu.memory_space<vmem>>, vector<32x96xf32>
    %cst_11 = arith.constant dense<0.000000e+00> : vector<8x96xf32>
    %11 = tpu.matmul %9, %10, %cst_11 {dimension_numbers = #tpu.dot_dimension_numbers<[1], [0], [0], [1], [0, 0, 1, 1], [], []>, precision = #tpu.contract_precision<fp32>} : vector<8x32xf32>, vector<32x96xf32>, vector<8x96xf32> -> vector<8x96xf32>
    %12 = vector.broadcast %0 : vector<1x96xf32> to vector<8x96xf32>
    %13 = arith.addf %11, %12 : vector<8x96xf32>
    %c0_12 = arith.constant 0 : index
    %c0_13 = arith.constant 0 : index
    %14 = vector.load %arg4[%c0_12, %c0_13] : memref<32x96xf32, #tpu.memory_space<vmem>>, vector<32x96xf32>
    %cst_14 = arith.constant 0.000000e+00 : f32
    %15 = vector.broadcast %cst_14 : f32 to vector<1x32xf32>
    %cst_15 = arith.constant dense<0.000000e+00> : vector<1x96xf32>
    %16 = tpu.matmul %15, %14, %cst_15 {dimension_numbers = #tpu.dot_dimension_numbers<[1], [0], [0], [1], [0, 0, 1, 1], [], []>, precision = #tpu.contract_precision<fp32>} : vector<1x32xf32>, vector<32x96xf32>, vector<1x96xf32> -> vector<1x96xf32>
    %17 = vector.extract_strided_slice %13 {offsets = [0, 0], sizes = [1, 32], strides = [1, 1]} : vector<8x96xf32> to vector<1x32xf32>
    %18 = vector.extract_strided_slice %16 {offsets = [0, 0], sizes = [1, 32], strides = [1, 1]} : vector<1x96xf32> to vector<1x32xf32>
    %19 = arith.addf %17, %18 : vector<1x32xf32>
    %20 = arith.negf %19 : vector<1x32xf32>
    %21 = math.exp %20 : vector<1x32xf32>
    %cst_16 = arith.constant 1.000000e+00 : f32
    %22 = vector.broadcast %cst_16 : f32 to vector<1x32xf32>
    %23 = arith.addf %22, %21 : vector<1x32xf32>
    %24 = arith.divf %22, %23 : vector<1x32xf32>
    %25 = vector.extract_strided_slice %13 {offsets = [0, 32], sizes = [1, 32], strides = [1, 1]} : vector<8x96xf32> to vector<1x32xf32>
    %26 = vector.extract_strided_slice %16 {offsets = [0, 32], sizes = [1, 32], strides = [1, 1]} : vector<1x96xf32> to vector<1x32xf32>
    %27 = arith.addf %25, %26 : vector<1x32xf32>
    %28 = arith.negf %27 : vector<1x32xf32>
    %29 = math.exp %28 : vector<1x32xf32>
    %cst_17 = arith.constant 1.000000e+00 : f32
    %30 = vector.broadcast %cst_17 : f32 to vector<1x32xf32>
    %31 = arith.addf %30, %29 : vector<1x32xf32>
    %32 = arith.divf %30, %31 : vector<1x32xf32>
    %33 = vector.extract_strided_slice %13 {offsets = [0, 64], sizes = [1, 32], strides = [1, 1]} : vector<8x96xf32> to vector<1x32xf32>
    %34 = vector.extract_strided_slice %16 {offsets = [0, 64], sizes = [1, 32], strides = [1, 1]} : vector<1x96xf32> to vector<1x32xf32>
    %35 = arith.addf %34, %1 : vector<1x32xf32>
    %36 = arith.mulf %24, %35 : vector<1x32xf32>
    %37 = arith.addf %33, %36 : vector<1x32xf32>
    %38 = math.tanh %37 : vector<1x32xf32>
    %cst_18 = arith.constant 1.000000e+00 : f32
    %39 = vector.broadcast %cst_18 : f32 to vector<1x32xf32>
    %40 = arith.subf %39, %32 : vector<1x32xf32>
    %41 = arith.mulf %40, %38 : vector<1x32xf32>
    %42 = arith.mulf %32, %15 : vector<1x32xf32>
    %43 = arith.addf %41, %42 : vector<1x32xf32>
    %cst_19 = arith.constant dense<0.000000e+00> : vector<1x96xf32>
    %44 = tpu.matmul %43, %14, %cst_19 {dimension_numbers = #tpu.dot_dimension_numbers<[1], [0], [0], [1], [0, 0, 1, 1], [], []>, precision = #tpu.contract_precision<fp32>} : vector<1x32xf32>, vector<32x96xf32>, vector<1x96xf32> -> vector<1x96xf32>
    %45 = vector.extract_strided_slice %13 {offsets = [1, 0], sizes = [1, 32], strides = [1, 1]} : vector<8x96xf32> to vector<1x32xf32>
    %46 = vector.extract_strided_slice %44 {offsets = [0, 0], sizes = [1, 32], strides = [1, 1]} : vector<1x96xf32> to vector<1x32xf32>
    %47 = arith.addf %45, %46 : vector<1x32xf32>
    %48 = arith.negf %47 : vector<1x32xf32>
    %49 = math.exp %48 : vector<1x32xf32>
    %cst_20 = arith.constant 1.000000e+00 : f32
    %50 = vector.broadcast %cst_20 : f32 to vector<1x32xf32>
    %51 = arith.addf %50, %49 : vector<1x32xf32>
    %52 = arith.divf %50, %51 : vector<1x32xf32>
    %53 = vector.extract_strided_slice %13 {offsets = [1, 32], sizes = [1, 32], strides = [1, 1]} : vector<8x96xf32> to vector<1x32xf32>
    %54 = vector.extract_strided_slice %44 {offsets = [0, 32], sizes = [1, 32], strides = [1, 1]} : vector<1x96xf32> to vector<1x32xf32>
    %55 = arith.addf %53, %54 : vector<1x32xf32>
    %56 = arith.negf %55 : vector<1x32xf32>
    %57 = math.exp %56 : vector<1x32xf32>
    %cst_21 = arith.constant 1.000000e+00 : f32
    %58 = vector.broadcast %cst_21 : f32 to vector<1x32xf32>
    %59 = arith.addf %58, %57 : vector<1x32xf32>
    %60 = arith.divf %58, %59 : vector<1x32xf32>
    %61 = vector.extract_strided_slice %13 {offsets = [1, 64], sizes = [1, 32], strides = [1, 1]} : vector<8x96xf32> to vector<1x32xf32>
    %62 = vector.extract_strided_slice %44 {offsets = [0, 64], sizes = [1, 32], strides = [1, 1]} : vector<1x96xf32> to vector<1x32xf32>
    %63 = arith.addf %62, %1 : vector<1x32xf32>
    %64 = arith.mulf %52, %63 : vector<1x32xf32>
    %65 = arith.addf %61, %64 : vector<1x32xf32>
    %66 = math.tanh %65 : vector<1x32xf32>
    %cst_22 = arith.constant 1.000000e+00 : f32
    %67 = vector.broadcast %cst_22 : f32 to vector<1x32xf32>
    %68 = arith.subf %67, %60 : vector<1x32xf32>
    %69 = arith.mulf %68, %66 : vector<1x32xf32>
    %70 = arith.mulf %60, %43 : vector<1x32xf32>
    %71 = arith.addf %69, %70 : vector<1x32xf32>
    %cst_23 = arith.constant dense<0.000000e+00> : vector<1x96xf32>
    %72 = tpu.matmul %71, %14, %cst_23 {dimension_numbers = #tpu.dot_dimension_numbers<[1], [0], [0], [1], [0, 0, 1, 1], [], []>, precision = #tpu.contract_precision<fp32>} : vector<1x32xf32>, vector<32x96xf32>, vector<1x96xf32> -> vector<1x96xf32>
    %73 = vector.extract_strided_slice %13 {offsets = [2, 0], sizes = [1, 32], strides = [1, 1]} : vector<8x96xf32> to vector<1x32xf32>
    %74 = vector.extract_strided_slice %72 {offsets = [0, 0], sizes = [1, 32], strides = [1, 1]} : vector<1x96xf32> to vector<1x32xf32>
    %75 = arith.addf %73, %74 : vector<1x32xf32>
    %76 = arith.negf %75 : vector<1x32xf32>
    %77 = math.exp %76 : vector<1x32xf32>
    %cst_24 = arith.constant 1.000000e+00 : f32
    %78 = vector.broadcast %cst_24 : f32 to vector<1x32xf32>
    %79 = arith.addf %78, %77 : vector<1x32xf32>
    %80 = arith.divf %78, %79 : vector<1x32xf32>
    %81 = vector.extract_strided_slice %13 {offsets = [2, 32], sizes = [1, 32], strides = [1, 1]} : vector<8x96xf32> to vector<1x32xf32>
    %82 = vector.extract_strided_slice %72 {offsets = [0, 32], sizes = [1, 32], strides = [1, 1]} : vector<1x96xf32> to vector<1x32xf32>
    %83 = arith.addf %81, %82 : vector<1x32xf32>
    %84 = arith.negf %83 : vector<1x32xf32>
    %85 = math.exp %84 : vector<1x32xf32>
    %cst_25 = arith.constant 1.000000e+00 : f32
    %86 = vector.broadcast %cst_25 : f32 to vector<1x32xf32>
    %87 = arith.addf %86, %85 : vector<1x32xf32>
    %88 = arith.divf %86, %87 : vector<1x32xf32>
    %89 = vector.extract_strided_slice %13 {offsets = [2, 64], sizes = [1, 32], strides = [1, 1]} : vector<8x96xf32> to vector<1x32xf32>
    %90 = vector.extract_strided_slice %72 {offsets = [0, 64], sizes = [1, 32], strides = [1, 1]} : vector<1x96xf32> to vector<1x32xf32>
    %91 = arith.addf %90, %1 : vector<1x32xf32>
    %92 = arith.mulf %80, %91 : vector<1x32xf32>
    %93 = arith.addf %89, %92 : vector<1x32xf32>
    %94 = math.tanh %93 : vector<1x32xf32>
    %cst_26 = arith.constant 1.000000e+00 : f32
    %95 = vector.broadcast %cst_26 : f32 to vector<1x32xf32>
    %96 = arith.subf %95, %88 : vector<1x32xf32>
    %97 = arith.mulf %96, %94 : vector<1x32xf32>
    %98 = arith.mulf %88, %71 : vector<1x32xf32>
    %99 = arith.addf %97, %98 : vector<1x32xf32>
    %cst_27 = arith.constant dense<0.000000e+00> : vector<1x96xf32>
    %100 = tpu.matmul %99, %14, %cst_27 {dimension_numbers = #tpu.dot_dimension_numbers<[1], [0], [0], [1], [0, 0, 1, 1], [], []>, precision = #tpu.contract_precision<fp32>} : vector<1x32xf32>, vector<32x96xf32>, vector<1x96xf32> -> vector<1x96xf32>
    %101 = vector.extract_strided_slice %13 {offsets = [3, 0], sizes = [1, 32], strides = [1, 1]} : vector<8x96xf32> to vector<1x32xf32>
    %102 = vector.extract_strided_slice %100 {offsets = [0, 0], sizes = [1, 32], strides = [1, 1]} : vector<1x96xf32> to vector<1x32xf32>
    %103 = arith.addf %101, %102 : vector<1x32xf32>
    %104 = arith.negf %103 : vector<1x32xf32>
    %105 = math.exp %104 : vector<1x32xf32>
    %cst_28 = arith.constant 1.000000e+00 : f32
    %106 = vector.broadcast %cst_28 : f32 to vector<1x32xf32>
    %107 = arith.addf %106, %105 : vector<1x32xf32>
    %108 = arith.divf %106, %107 : vector<1x32xf32>
    %109 = vector.extract_strided_slice %13 {offsets = [3, 32], sizes = [1, 32], strides = [1, 1]} : vector<8x96xf32> to vector<1x32xf32>
    %110 = vector.extract_strided_slice %100 {offsets = [0, 32], sizes = [1, 32], strides = [1, 1]} : vector<1x96xf32> to vector<1x32xf32>
    %111 = arith.addf %109, %110 : vector<1x32xf32>
    %112 = arith.negf %111 : vector<1x32xf32>
    %113 = math.exp %112 : vector<1x32xf32>
    %cst_29 = arith.constant 1.000000e+00 : f32
    %114 = vector.broadcast %cst_29 : f32 to vector<1x32xf32>
    %115 = arith.addf %114, %113 : vector<1x32xf32>
    %116 = arith.divf %114, %115 : vector<1x32xf32>
    %117 = vector.extract_strided_slice %13 {offsets = [3, 64], sizes = [1, 32], strides = [1, 1]} : vector<8x96xf32> to vector<1x32xf32>
    %118 = vector.extract_strided_slice %100 {offsets = [0, 64], sizes = [1, 32], strides = [1, 1]} : vector<1x96xf32> to vector<1x32xf32>
    %119 = arith.addf %118, %1 : vector<1x32xf32>
    %120 = arith.mulf %108, %119 : vector<1x32xf32>
    %121 = arith.addf %117, %120 : vector<1x32xf32>
    %122 = math.tanh %121 : vector<1x32xf32>
    %cst_30 = arith.constant 1.000000e+00 : f32
    %123 = vector.broadcast %cst_30 : f32 to vector<1x32xf32>
    %124 = arith.subf %123, %116 : vector<1x32xf32>
    %125 = arith.mulf %124, %122 : vector<1x32xf32>
    %126 = arith.mulf %116, %99 : vector<1x32xf32>
    %127 = arith.addf %125, %126 : vector<1x32xf32>
    %cst_31 = arith.constant dense<0.000000e+00> : vector<1x96xf32>
    %128 = tpu.matmul %127, %14, %cst_31 {dimension_numbers = #tpu.dot_dimension_numbers<[1], [0], [0], [1], [0, 0, 1, 1], [], []>, precision = #tpu.contract_precision<fp32>} : vector<1x32xf32>, vector<32x96xf32>, vector<1x96xf32> -> vector<1x96xf32>
    %129 = vector.extract_strided_slice %13 {offsets = [4, 0], sizes = [1, 32], strides = [1, 1]} : vector<8x96xf32> to vector<1x32xf32>
    %130 = vector.extract_strided_slice %128 {offsets = [0, 0], sizes = [1, 32], strides = [1, 1]} : vector<1x96xf32> to vector<1x32xf32>
    %131 = arith.addf %129, %130 : vector<1x32xf32>
    %132 = arith.negf %131 : vector<1x32xf32>
    %133 = math.exp %132 : vector<1x32xf32>
    %cst_32 = arith.constant 1.000000e+00 : f32
    %134 = vector.broadcast %cst_32 : f32 to vector<1x32xf32>
    %135 = arith.addf %134, %133 : vector<1x32xf32>
    %136 = arith.divf %134, %135 : vector<1x32xf32>
    %137 = vector.extract_strided_slice %13 {offsets = [4, 32], sizes = [1, 32], strides = [1, 1]} : vector<8x96xf32> to vector<1x32xf32>
    %138 = vector.extract_strided_slice %128 {offsets = [0, 32], sizes = [1, 32], strides = [1, 1]} : vector<1x96xf32> to vector<1x32xf32>
    %139 = arith.addf %137, %138 : vector<1x32xf32>
    %140 = arith.negf %139 : vector<1x32xf32>
    %141 = math.exp %140 : vector<1x32xf32>
    %cst_33 = arith.constant 1.000000e+00 : f32
    %142 = vector.broadcast %cst_33 : f32 to vector<1x32xf32>
    %143 = arith.addf %142, %141 : vector<1x32xf32>
    %144 = arith.divf %142, %143 : vector<1x32xf32>
    %145 = vector.extract_strided_slice %13 {offsets = [4, 64], sizes = [1, 32], strides = [1, 1]} : vector<8x96xf32> to vector<1x32xf32>
    %146 = vector.extract_strided_slice %128 {offsets = [0, 64], sizes = [1, 32], strides = [1, 1]} : vector<1x96xf32> to vector<1x32xf32>
    %147 = arith.addf %146, %1 : vector<1x32xf32>
    %148 = arith.mulf %136, %147 : vector<1x32xf32>
    %149 = arith.addf %145, %148 : vector<1x32xf32>
    %150 = math.tanh %149 : vector<1x32xf32>
    %cst_34 = arith.constant 1.000000e+00 : f32
    %151 = vector.broadcast %cst_34 : f32 to vector<1x32xf32>
    %152 = arith.subf %151, %144 : vector<1x32xf32>
    %153 = arith.mulf %152, %150 : vector<1x32xf32>
    %154 = arith.mulf %144, %127 : vector<1x32xf32>
    %155 = arith.addf %153, %154 : vector<1x32xf32>
    %cst_35 = arith.constant dense<0.000000e+00> : vector<1x96xf32>
    %156 = tpu.matmul %155, %14, %cst_35 {dimension_numbers = #tpu.dot_dimension_numbers<[1], [0], [0], [1], [0, 0, 1, 1], [], []>, precision = #tpu.contract_precision<fp32>} : vector<1x32xf32>, vector<32x96xf32>, vector<1x96xf32> -> vector<1x96xf32>
    %157 = vector.extract_strided_slice %13 {offsets = [5, 0], sizes = [1, 32], strides = [1, 1]} : vector<8x96xf32> to vector<1x32xf32>
    %158 = vector.extract_strided_slice %156 {offsets = [0, 0], sizes = [1, 32], strides = [1, 1]} : vector<1x96xf32> to vector<1x32xf32>
    %159 = arith.addf %157, %158 : vector<1x32xf32>
    %160 = arith.negf %159 : vector<1x32xf32>
    %161 = math.exp %160 : vector<1x32xf32>
    %cst_36 = arith.constant 1.000000e+00 : f32
    %162 = vector.broadcast %cst_36 : f32 to vector<1x32xf32>
    %163 = arith.addf %162, %161 : vector<1x32xf32>
    %164 = arith.divf %162, %163 : vector<1x32xf32>
    %165 = vector.extract_strided_slice %13 {offsets = [5, 32], sizes = [1, 32], strides = [1, 1]} : vector<8x96xf32> to vector<1x32xf32>
    %166 = vector.extract_strided_slice %156 {offsets = [0, 32], sizes = [1, 32], strides = [1, 1]} : vector<1x96xf32> to vector<1x32xf32>
    %167 = arith.addf %165, %166 : vector<1x32xf32>
    %168 = arith.negf %167 : vector<1x32xf32>
    %169 = math.exp %168 : vector<1x32xf32>
    %cst_37 = arith.constant 1.000000e+00 : f32
    %170 = vector.broadcast %cst_37 : f32 to vector<1x32xf32>
    %171 = arith.addf %170, %169 : vector<1x32xf32>
    %172 = arith.divf %170, %171 : vector<1x32xf32>
    %173 = vector.extract_strided_slice %13 {offsets = [5, 64], sizes = [1, 32], strides = [1, 1]} : vector<8x96xf32> to vector<1x32xf32>
    %174 = vector.extract_strided_slice %156 {offsets = [0, 64], sizes = [1, 32], strides = [1, 1]} : vector<1x96xf32> to vector<1x32xf32>
    %175 = arith.addf %174, %1 : vector<1x32xf32>
    %176 = arith.mulf %164, %175 : vector<1x32xf32>
    %177 = arith.addf %173, %176 : vector<1x32xf32>
    %178 = math.tanh %177 : vector<1x32xf32>
    %cst_38 = arith.constant 1.000000e+00 : f32
    %179 = vector.broadcast %cst_38 : f32 to vector<1x32xf32>
    %180 = arith.subf %179, %172 : vector<1x32xf32>
    %181 = arith.mulf %180, %178 : vector<1x32xf32>
    %182 = arith.mulf %172, %155 : vector<1x32xf32>
    %183 = arith.addf %181, %182 : vector<1x32xf32>
    %cst_39 = arith.constant dense<0.000000e+00> : vector<1x96xf32>
    %184 = tpu.matmul %183, %14, %cst_39 {dimension_numbers = #tpu.dot_dimension_numbers<[1], [0], [0], [1], [0, 0, 1, 1], [], []>, precision = #tpu.contract_precision<fp32>} : vector<1x32xf32>, vector<32x96xf32>, vector<1x96xf32> -> vector<1x96xf32>
    %185 = vector.extract_strided_slice %13 {offsets = [6, 0], sizes = [1, 32], strides = [1, 1]} : vector<8x96xf32> to vector<1x32xf32>
    %186 = vector.extract_strided_slice %184 {offsets = [0, 0], sizes = [1, 32], strides = [1, 1]} : vector<1x96xf32> to vector<1x32xf32>
    %187 = arith.addf %185, %186 : vector<1x32xf32>
    %188 = arith.negf %187 : vector<1x32xf32>
    %189 = math.exp %188 : vector<1x32xf32>
    %cst_40 = arith.constant 1.000000e+00 : f32
    %190 = vector.broadcast %cst_40 : f32 to vector<1x32xf32>
    %191 = arith.addf %190, %189 : vector<1x32xf32>
    %192 = arith.divf %190, %191 : vector<1x32xf32>
    %193 = vector.extract_strided_slice %13 {offsets = [6, 32], sizes = [1, 32], strides = [1, 1]} : vector<8x96xf32> to vector<1x32xf32>
    %194 = vector.extract_strided_slice %184 {offsets = [0, 32], sizes = [1, 32], strides = [1, 1]} : vector<1x96xf32> to vector<1x32xf32>
    %195 = arith.addf %193, %194 : vector<1x32xf32>
    %196 = arith.negf %195 : vector<1x32xf32>
    %197 = math.exp %196 : vector<1x32xf32>
    %cst_41 = arith.constant 1.000000e+00 : f32
    %198 = vector.broadcast %cst_41 : f32 to vector<1x32xf32>
    %199 = arith.addf %198, %197 : vector<1x32xf32>
    %200 = arith.divf %198, %199 : vector<1x32xf32>
    %201 = vector.extract_strided_slice %13 {offsets = [6, 64], sizes = [1, 32], strides = [1, 1]} : vector<8x96xf32> to vector<1x32xf32>
    %202 = vector.extract_strided_slice %184 {offsets = [0, 64], sizes = [1, 32], strides = [1, 1]} : vector<1x96xf32> to vector<1x32xf32>
    %203 = arith.addf %202, %1 : vector<1x32xf32>
    %204 = arith.mulf %192, %203 : vector<1x32xf32>
    %205 = arith.addf %201, %204 : vector<1x32xf32>
    %206 = math.tanh %205 : vector<1x32xf32>
    %cst_42 = arith.constant 1.000000e+00 : f32
    %207 = vector.broadcast %cst_42 : f32 to vector<1x32xf32>
    %208 = arith.subf %207, %200 : vector<1x32xf32>
    %209 = arith.mulf %208, %206 : vector<1x32xf32>
    %210 = arith.mulf %200, %183 : vector<1x32xf32>
    %211 = arith.addf %209, %210 : vector<1x32xf32>
    %cst_43 = arith.constant dense<0.000000e+00> : vector<1x96xf32>
    %212 = tpu.matmul %211, %14, %cst_43 {dimension_numbers = #tpu.dot_dimension_numbers<[1], [0], [0], [1], [0, 0, 1, 1], [], []>, precision = #tpu.contract_precision<fp32>} : vector<1x32xf32>, vector<32x96xf32>, vector<1x96xf32> -> vector<1x96xf32>
    %213 = vector.extract_strided_slice %13 {offsets = [7, 0], sizes = [1, 32], strides = [1, 1]} : vector<8x96xf32> to vector<1x32xf32>
    %214 = vector.extract_strided_slice %212 {offsets = [0, 0], sizes = [1, 32], strides = [1, 1]} : vector<1x96xf32> to vector<1x32xf32>
    %215 = arith.addf %213, %214 : vector<1x32xf32>
    %216 = arith.negf %215 : vector<1x32xf32>
    %217 = math.exp %216 : vector<1x32xf32>
    %cst_44 = arith.constant 1.000000e+00 : f32
    %218 = vector.broadcast %cst_44 : f32 to vector<1x32xf32>
    %219 = arith.addf %218, %217 : vector<1x32xf32>
    %220 = arith.divf %218, %219 : vector<1x32xf32>
    %221 = vector.extract_strided_slice %13 {offsets = [7, 32], sizes = [1, 32], strides = [1, 1]} : vector<8x96xf32> to vector<1x32xf32>
    %222 = vector.extract_strided_slice %212 {offsets = [0, 32], sizes = [1, 32], strides = [1, 1]} : vector<1x96xf32> to vector<1x32xf32>
    %223 = arith.addf %221, %222 : vector<1x32xf32>
    %224 = arith.negf %223 : vector<1x32xf32>
    %225 = math.exp %224 : vector<1x32xf32>
    %cst_45 = arith.constant 1.000000e+00 : f32
    %226 = vector.broadcast %cst_45 : f32 to vector<1x32xf32>
    %227 = arith.addf %226, %225 : vector<1x32xf32>
    %228 = arith.divf %226, %227 : vector<1x32xf32>
    %229 = vector.extract_strided_slice %13 {offsets = [7, 64], sizes = [1, 32], strides = [1, 1]} : vector<8x96xf32> to vector<1x32xf32>
    %230 = vector.extract_strided_slice %212 {offsets = [0, 64], sizes = [1, 32], strides = [1, 1]} : vector<1x96xf32> to vector<1x32xf32>
    %231 = arith.addf %230, %1 : vector<1x32xf32>
    %232 = arith.mulf %220, %231 : vector<1x32xf32>
    %233 = arith.addf %229, %232 : vector<1x32xf32>
    %234 = math.tanh %233 : vector<1x32xf32>
    %cst_46 = arith.constant 1.000000e+00 : f32
    %235 = vector.broadcast %cst_46 : f32 to vector<1x32xf32>
    %236 = arith.subf %235, %228 : vector<1x32xf32>
    %237 = arith.mulf %236, %234 : vector<1x32xf32>
    %238 = arith.mulf %228, %211 : vector<1x32xf32>
    %239 = arith.addf %237, %238 : vector<1x32xf32>
    %240 = tpu.concatenate %183, %211, %239 in 0 : vector<1x32xf32>, vector<1x32xf32>, vector<1x32xf32> -> vector<3x32xf32>
    %cst_47 = arith.constant dense<0.000000e+00> : vector<3x4xf32>
    %241 = tpu.matmul %240, %8, %cst_47 {dimension_numbers = #tpu.dot_dimension_numbers<[1], [1], [0], [0], [0, 0, 1, 0], [], []>, precision = #tpu.contract_precision<fp32>} : vector<3x32xf32>, vector<4x32xf32>, vector<3x4xf32> -> vector<3x4xf32>
    %cst_48 = arith.constant dense<0xFF800000> : vector<3xf32>
    %242 = vector.multi_reduction <maximumf>, %241, %cst_48 [1] : vector<3x4xf32> to vector<3xf32>
    %243 = vector.shape_cast %242 : vector<3xf32> to vector<3x1xf32>
    %244 = vector.broadcast %243 : vector<3x1xf32> to vector<3x4xf32>
    %245 = arith.subf %241, %244 : vector<3x4xf32>
    %246 = math.exp %245 : vector<3x4xf32>
    %cst_49 = arith.constant dense<0.000000e+00> : vector<3xf32>
    %247 = vector.multi_reduction <add>, %246, %cst_49 [1] : vector<3x4xf32> to vector<3xf32>
    %248 = vector.shape_cast %247 : vector<3xf32> to vector<3x1xf32>
    %249 = vector.broadcast %248 : vector<3x1xf32> to vector<3x4xf32>
    %250 = arith.divf %246, %249 : vector<3x4xf32>
    %cst_50 = arith.constant dense<0.000000e+00> : vector<3x32xf32>
    %251 = tpu.matmul %250, %8, %cst_50 {dimension_numbers = #tpu.dot_dimension_numbers<[1], [0], [0], [1], [0, 0, 1, 1], [], []>, precision = #tpu.contract_precision<fp32>} : vector<3x4xf32>, vector<4x32xf32>, vector<3x32xf32> -> vector<3x32xf32>
    %c0_51 = arith.constant 0 : index
    %c0_52 = arith.constant 0 : index
    %252 = vector.load %arg5[%c0_51, %c0_52] : memref<64x128xf32, #tpu.memory_space<vmem>>, vector<64x128xf32>
    %253 = vector.extract_strided_slice %252 {offsets = [0, 0], sizes = [32, 128], strides = [1, 1]} : vector<64x128xf32> to vector<32x128xf32>
    %cst_53 = arith.constant dense<0.000000e+00> : vector<3x128xf32>
    %254 = tpu.matmul %240, %253, %cst_53 {dimension_numbers = #tpu.dot_dimension_numbers<[1], [0], [0], [1], [0, 0, 1, 1], [], []>, precision = #tpu.contract_precision<fp32>} : vector<3x32xf32>, vector<32x128xf32>, vector<3x128xf32> -> vector<3x128xf32>
    %255 = vector.extract_strided_slice %252 {offsets = [32, 0], sizes = [32, 128], strides = [1, 1]} : vector<64x128xf32> to vector<32x128xf32>
    %cst_54 = arith.constant dense<0.000000e+00> : vector<3x128xf32>
    %256 = tpu.matmul %251, %255, %cst_54 {dimension_numbers = #tpu.dot_dimension_numbers<[1], [0], [0], [1], [0, 0, 1, 1], [], []>, precision = #tpu.contract_precision<fp32>} : vector<3x32xf32>, vector<32x128xf32>, vector<3x128xf32> -> vector<3x128xf32>
    %257 = arith.addf %254, %256 : vector<3x128xf32>
    %c0_55 = arith.constant 0 : index
    %c0_56 = arith.constant 0 : index
    %258 = vector.load %arg7[%c0_55, %c0_56] : memref<1x128xf32, #tpu.memory_space<vmem>>, vector<1x128xf32>
    %259 = vector.broadcast %258 : vector<1x128xf32> to vector<3x128xf32>
    %260 = arith.addf %257, %259 : vector<3x128xf32>
    %cst_57 = arith.constant dense<0xFF800000> : vector<3xf32>
    %261 = vector.multi_reduction <maximumf>, %260, %cst_57 [1] : vector<3x128xf32> to vector<3xf32>
    %262 = vector.shape_cast %261 : vector<3xf32> to vector<3x1xf32>
    %263 = vector.broadcast %262 : vector<3x1xf32> to vector<3x128xf32>
    %264 = arith.subf %260, %263 : vector<3x128xf32>
    %265 = math.exp %264 : vector<3x128xf32>
    %cst_58 = arith.constant dense<0.000000e+00> : vector<3xf32>
    %266 = vector.multi_reduction <add>, %265, %cst_58 [1] : vector<3x128xf32> to vector<3xf32>
    %267 = vector.shape_cast %266 : vector<3xf32> to vector<3x1xf32>
    %268 = math.log %267 : vector<3x1xf32>
    %269 = arith.addf %268, %262 : vector<3x1xf32>
    %270 = vector.broadcast %269 : vector<3x1xf32> to vector<3x128xf32>
    %271 = arith.subf %260, %270 : vector<3x128xf32>
    %c0_59 = arith.constant 0 : index
    %c0_60 = arith.constant 0 : index
    %272 = vector.load %arg8[%c0_59, %c0_60] : memref<3x128xf32, #tpu.memory_space<vmem>>, vector<3x128xf32>
    tpu.vector_store %arg8[%c0_59, %c0_60], %271 {strides = array<i32>} : memref<3x128xf32, #tpu.memory_space<vmem>>, vector<3x128xf32>,
    return
  }
}

</mosaic_0001>

<bundles_post_ra>
// kernel: tpu_custom_call.1
= control target key start
LH: loop header
LB: loop body
LE: loop exit
PB: predicated region body
PF: predicated region fallthrough
CT: control target
= control target key end

     0   :  { %13 = vsyncpa [#allocation3], 0  ;;  %s10284_s0 = inlined_call_operand.hbm [shape: f32[8,32], index: 0, kind: input, shape index: {}]   ;;  %s10285_s1 = inlined_call_operand.hbm [shape: f32[4,32], index: 1, kind: input, shape index: {}]   ;;  %s10286_s2 = inlined_call_operand.hbm [shape: f32[32,32], index: 2, kind: input, shape index: {}]   ;;  %s10287_s3 = inlined_call_operand.hbm [shape: f32[32,96], index: 3, kind: input, shape index: {}]   ;;  %s10288_s4 = inlined_call_operand.hbm [shape: f32[32,96], index: 4, kind: input, shape index: {}]   ;;  %s10289_s5 = inlined_call_operand.hbm [shape: f32[64,128], index: 5, kind: input, shape index: {}]   ;;  %s10290_s6 = inlined_call_operand.vmem [shape: f32[3,96], index: 6, kind: input, shape index: {}]   ;;  %s10291_s7 = inlined_call_operand.vmem [shape: f32[1,128], index: 7, kind: input, shape index: {}]   ;;  %s10292_s8 = inlined_call_operand.hbm [shape: f32[3,128], index: 8, kind: output, shape index: {}]  }
   0x1   :  { %14 = vsyncpa [#allocation6], 0 }
   0x2   :  { %15 = vsyncpa [#allocation9], 0 }
   0x3   :  { %16 = vsyncpa [#allocation12], 0 }
   0x4   :  { %17 = vsyncpa [#allocation4], 0  ;;  %s9285_s27 = smov [#allocation5]   ;;  %s9121_s9 = scalar_lea.hbm %s10285_s1, 64 }
   0x5   :  { %s34_s28 = sshll.u32 %s9285_s27, 4  ;;  %p9122_p0 = scmp.ne.s32.totalorder %s10285_s1, %s9121_s9  ;;  %s35_s28 = int_to_ptr.vmem [resolvable:$true] %s34_s28 }
   0x6   :  { %p9125_p1 = scmp.lt.u32.totalorder %s9121_s9, %s10285_s1 }
   0x8   :  { %p9127_p2 = pnand %p9125_p1, %p9122_p0 }
   0xa   :  { %9130 = shalt.err (!%p9127_p2)
}
   0xb   :  { %s9131_s14 = scalar_lea.vmem %s35_s28, 64  ;;  %p9136_p4 = scmp.lt.s32.totalorder %s35_s28, %s35_s28 }
   0xc   :  { %p9132_p3 = scmp.ne.s32.totalorder %s35_s28, %s9131_s14  ;;  %p9137_p5 = scmp.lt.s32.totalorder %s9131_s14, %s9131_s14 }
   0xe   :  { %p9138_p6 = por %p9137_p5, %p9136_p4 }
  0x10   :  { %p9139_p7 = pnand %p9138_p6, %p9132_p3 }
  0x12   :  { %9142 = shalt.err (!%p9139_p7)
}
  0x13   :  { %37 = dma.hbm_to_vmem [thread:$0]  %s10285_s1, 64, %s35_s28, [#allocation6]  }
  0x14   :  { %s9286_s17 = smov [#allocation8]   ;;  %s9287_s19 = smov [#allocation2]  }
  0x15   :  { %s55_s18 = sshll.u32 %s9286_s17, 4  ;;  %s24_s20 = sshll.u32 %s9287_s19, 4  ;;  %s56_s18 = int_to_ptr.vmem [resolvable:$true] %s55_s18  ;;  %s25_s20 = int_to_ptr.vmem [resolvable:$true] %s24_s20 }
  0x16   :  { %s9143_s23 = scalar_lea.hbm %s10287_s3, 512 }
  0x17   :  { %p9144_p8 = scmp.ne.s32.totalorder %s10287_s3, %s9143_s23  ;;  %p9147_p9 = scmp.lt.u32.totalorder %s9143_s23, %s10287_s3 }
  0x19   :  { %p9149_p10 = pnand %p9147_p9, %p9144_p8 }
  0x1b   :  { %9152 = shalt.err (!%p9149_p10)
}
  0x1c   :  { %s9153_s1 = scalar_lea.vmem %s56_s18, 512  ;;  %p9158_p12 = scmp.lt.s32.totalorder %s56_s18, %s56_s18 }
  0x1d   :  { %p9154_p11 = scmp.ne.s32.totalorder %s56_s18, %s9153_s1  ;;  %p9159_p13 = scmp.lt.s32.totalorder %s9153_s1, %s9153_s1 }
  0x1f   :  { %p9160_p0 = por %p9159_p13, %p9158_p12 }
  0x21   :  { %p9161_p1 = pnand %p9160_p0, %p9154_p11 }
  0x23   :  { %9164 = shalt.err (!%p9161_p1)
}
  0x24   :  { %s9288_s28 = smov 128   ;;  %s9289_s29 = smov 8  }
  0x25   :  { %61 = dma.hbm_to_vmem [thread:$0]  %s10287_s3, 512, %s56_s18, [#allocation9], %s9288_s28, %s9288_s28, %s9289_s29  }
  0x26   :  { %s9165_s12 = scalar_lea.hbm %s10284_s0, 128 }
  0x27   :  { %p9166_p2 = scmp.ne.s32.totalorder %s10284_s0, %s9165_s12  ;;  %p9169_p3 = scmp.lt.u32.totalorder %s9165_s12, %s10284_s0 }
  0x29   :  { %p9171_p4 = pnand %p9169_p3, %p9166_p2 }
  0x2b   :  { %9174 = shalt.err (!%p9171_p4)
}
  0x2c   :  { %s9175_s17 = scalar_lea.vmem %s25_s20, 128  ;;  %p9180_p6 = scmp.lt.s32.totalorder %s25_s20, %s25_s20 }
  0x2d   :  { %p9176_p5 = scmp.ne.s32.totalorder %s25_s20, %s9175_s17  ;;  %p9181_p7 = scmp.lt.s32.totalorder %s9175_s17, %s9175_s17 }
  0x2f   :  { %p9182_p8 = por %p9181_p7, %p9180_p6 }
  0x31   :  { %p9183_p9 = pnand %p9182_p8, %p9176_p5 }
  0x33   :  { %9186 = shalt.err (!%p9183_p9)
}
  0x34   :  { %27 = dma.hbm_to_vmem [thread:$0]  %s10284_s0, 128, %s25_s20, [#allocation3]  }
  0x35   :  { %s9290_s19 = smov [#allocation7]   ;;  %s9291_s22 = smov [#allocation10]  }
  0x36   :  { %s43_s21 = sshll.u32 %s9290_s19, 4  ;;  %s67_s23 = sshll.u32 %s9291_s22, 4  ;;  %s44_s21 = int_to_ptr.vmem [resolvable:$true] %s43_s21  ;;  %s68_s23 = int_to_ptr.vmem [resolvable:$true] %s67_s23 }
  0x37   :  { %s9187_s26 = scalar_lea.hbm %s10286_s2, 512 }
  0x38   :  { %p9188_p10 = scmp.ne.s32.totalorder %s10286_s2, %s9187_s26  ;;  %p9191_p11 = scmp.lt.u32.totalorder %s9187_s26, %s10286_s2 }
  0x3a   :  { %p9193_p12 = pnand %p9191_p11, %p9188_p10 }
  0x3c   :  { %9196 = shalt.err (!%p9193_p12)
}
  0x3d   :  { %s9197_s0 = scalar_lea.vmem %s44_s21, 512  ;;  %p9202_p0 = scmp.lt.s32.totalorder %s44_s21, %s44_s21 }
  0x3e   :  { %p9198_p13 = scmp.ne.s32.totalorder %s44_s21, %s9197_s0  ;;  %p9203_p1 = scmp.lt.s32.totalorder %s9197_s0, %s9197_s0 }
  0x40   :  { %p9204_p2 = por %p9203_p1, %p9202_p0 }
  0x42   :  { %p9205_p3 = pnand %p9204_p2, %p9198_p13 }
  0x44   :  { %9208 = shalt.err (!%p9205_p3)
}
  0x45   :  { %49 = dma.hbm_to_vmem [thread:$0]  %s10286_s2, 512, %s44_s21, [#allocation6], %s9288_s28, %s9288_s28, %s9289_s29  }
  0x46   :  { %s9209_s13 = scalar_lea.hbm %s10288_s4, 512 }
  0x47   :  { %p9210_p4 = scmp.ne.s32.totalorder %s10288_s4, %s9209_s13  ;;  %p9213_p5 = scmp.lt.u32.totalorder %s9209_s13, %s10288_s4 }
  0x49   :  { %p9215_p6 = pnand %p9213_p5, %p9210_p4 }
  0x4b   :  { %9218 = shalt.err (!%p9215_p6)
}
  0x4c   :  { %s9219_s3 = scalar_lea.vmem %s68_s23, 512  ;;  %p9224_p8 = scmp.lt.s32.totalorder %s68_s23, %s68_s23 }
  0x4d   :  { %p9220_p7 = scmp.ne.s32.totalorder %s68_s23, %s9219_s3  ;;  %p9225_p9 = scmp.lt.s32.totalorder %s9219_s3, %s9219_s3 }
  0x4f   :  { %p9226_p10 = por %p9225_p9, %p9224_p8 }
  0x51   :  { %p9227_p11 = pnand %p9226_p10, %p9220_p7 }
  0x53   :  { %9230 = shalt.err (!%p9227_p11)
}
  0x54   :  { %73 = dma.hbm_to_vmem [thread:$0]  %s10288_s4, 512, %s68_s23, [#allocation9], %s9288_s28, %s9288_s28, %s9289_s29  }
  0x55   :  { %s9292_s19 = smov [#allocation11]   ;;  %s9231_s25 = scalar_lea.hbm %s10289_s5, 1024 }
  0x56   :  { %s79_s21 = sshll.u32 %s9292_s19, 4  ;;  %p9232_p12 = scmp.ne.s32.totalorder %s10289_s5, %s9231_s25  ;;  %s80_s21 = int_to_ptr.vmem [resolvable:$true] %s79_s21 }
  0x57   :  { %p9235_p13 = scmp.lt.u32.totalorder %s9231_s25, %s10289_s5 }
  0x59   :  { %p9237_p0 = pnand %p9235_p13, %p9232_p12 }
  0x5b   :  { %9240 = shalt.err (!%p9237_p0)
}
  0x5c   :  { %s9241_s9 = scalar_lea.vmem %s80_s21, 1024  ;;  %p9246_p2 = scmp.lt.s32.totalorder %s80_s21, %s80_s21 }
  0x5d   :  { %p9242_p1 = scmp.ne.s32.totalorder %s80_s21, %s9241_s9  ;;  %p9247_p3 = scmp.lt.s32.totalorder %s9241_s9, %s9241_s9 }
  0x5f   :  { %p9248_p4 = por %p9247_p3, %p9246_p2 }
  0x61   :  { %p9249_p5 = pnand %p9248_p4, %p9242_p1 }
  0x63   :  { %9252 = shalt.err (!%p9249_p5)
}
  0x64   :  { %85 = dma.hbm_to_vmem [thread:$0]  %s10289_s5, 1024, %s80_s21, [#allocation12], %s9288_s28, %s9288_s28, %s9289_s29  }
  0x65   :  { %9275 = dma.done.wait [#allocation3], 128  }
  0x66   :  { %9276 = vsyncadd [#allocation3], 4294967168 }
  0x67   :  { %9277 = dma.done.wait [#allocation6], 576  }
  0x68   :  { %9278 = vsyncadd [#allocation6], 4294966720 }
  0x69   :  { %9279 = dma.done.wait [#allocation9], 1024  }
  0x6a   :  { %9280 = vsyncadd [#allocation9], 4294966272 }
  0x6b   :  { %9281 = dma.done.wait [#allocation12], 1024  }
  0x6c   :  { %9282 = vsyncadd [#allocation12], 4294966272  ;;  %v9293_v0 = vmov 0.0|0.0   ;;  %vm9294_vm0 = vmmov 0   ;;  %v9295_v1 = vmov 0.0   ;;  %vm120_vm1 = vcmask 261120  }
  0x6d   :  { %8495 = vmatprep.subr.bf16.mxu0 %v9293_v0  ;;  %7651 = vmatprep.mubr.msk.f32.mxu0 %vm9294_vm0, %v9295_v1  ;;  %v112_v2 = vld [vmem:[#allocation7] sm:$0xff]  ;;  %v113_v3 = vld [vmem:[#allocation7 + $0x8] sm:$0xff]  ;;  %v114_v4 = vld [vmem:[#allocation7 + $0x10] sm:$0xff]  ;;  %s9296_s29 = smov 64   ;;  %s9297_s10 = smov 96   ;;  %vm5777_vm2 = vcmask 1043456  }
  0x6e   :  { %8531 = vmatprep.subr.bf16.mxu1 %v9293_v0  ;;  %7717 = vmatprep.mubr.msk.f32.mxu1 %vm9294_vm0, %v9295_v1  ;;  %v125_v5 = vand.u32 4294901760, %v112_v2  ;;  %v128_v6 = vand.u32 4294901760, %v113_v3  ;;  %v115_v7 = vld [vmem:[#allocation7 + $0x18] sm:$0xff]  ;;  %v131_v8 = vand.u32 4294901760, %v114_v4  ;;  %v611_v12 = vld [vmem:[#allocation8] sm:$0xff]  ;;  %v612_v17 = vld [vmem:[#allocation8 + $0x8] sm:$0xff] }
  0x6f   :  { %v111_v9 = vld [vmem:[#allocation5] sm:$0xf]  ;;  %v134_v10 = vand.u32 4294901760, %v115_v7  ;;  %v623_v20 = vand.u32 4294901760, %v611_v12  ;;  %v109_v25 = vld [vmem:[%s10290_s6 + $0x1] sm:$0x1] }
  0x70   :  { %v122_v11 = vsel %vm120_vm1, %v111_v9, 0  ;;  %v9435_v13 = vpack.c.bf16 %v128_v6, %v125_v5  ;;  %v9437_v14 = vsub.f32 %v112_v2, %v125_v5  ;;  %v9439_v15 = vsub.f32 %v113_v3, %v128_v6  ;;  %1607 = vrot.lane.b32.xlu0 %v109_v25, %s9296_s29  ;;  %v613_v35 = vld [vmem:[#allocation8 + $0x10] sm:$0xff]  ;;  %v614_v36 = vld [vmem:[#allocation8 + $0x18] sm:$0xff]  ;;  %s9298_s14 = smov [#allocation13]  }
  0x71   :  { %v9441_v16 = vsub.f32 %v114_v4, %v131_v8  ;;  %v9443_v18 = vsub.f32 %v115_v7, %v134_v10  ;;  %v9445_v19 = vand.u32 4294901760, %v122_v11  ;;  %v9448_v21 = vpack.c.bf16 %v134_v10, %v131_v8  ;;  %v610_v47 = vld [vmem:[#allocation2] sm:$0xff]  ;;  %s7236_s15 = sshll.u32 %s9298_s14, 4  ;;  %s7237_s15 = int_to_ptr.vmem [resolvable:$true] %s7236_s15 }
  0x72   :  { %8497 = vmatpush3.bf16.msra.mxu0 %v9435_v13  ;;  %v206_v22 = vand.u32 4294901760, %v9437_v14  ;;  %v213_v23 = vand.u32 4294901760, %v9439_v15  ;;  %v626_v28 = vand.u32 4294901760, %v612_v17  ;;  %v9483_v41 = vsub.f32 %v611_v12, %v623_v20  ;;  %p9258_p7 = scmp.lt.s32.totalorder %s7237_s15, %s7237_s15 }
  0x73   :  { %v220_v24 = vand.u32 4294901760, %v9441_v16  ;;  %8498 = vmatprep.subr.bf16.mxu0 %v9293_v0  ;;  %v9458_v26 = vsub.f32 %v122_v11, %v9445_v19  ;;  %v227_v27 = vand.u32 4294901760, %v9443_v18  ;;  %v629_v45 = vand.u32 4294901760, %v613_v35 }
  0x74   :  { %v207_v29 = vsub.f32 %v9437_v14, %v206_v22  ;;  %v214_v30 = vsub.f32 %v9439_v15, %v213_v23  ;;  %v9475_v34 = vpack.c.bf16 %v626_v28, %v623_v20  ;;  %v9485_v42 = vsub.f32 %v612_v17, %v626_v28  ;;  %v1107_v28 = vld [vmem:[#allocation10] sm:$0xff] }
  0x75   :  { %v221_v31 = vsub.f32 %v9441_v16, %v220_v24  ;;  %v195_v32 = vand.u32 4294901760, %v9458_v26  ;;  %v228_v33 = vsub.f32 %v9443_v18, %v227_v27  ;;  %v632_v46 = vand.u32 4294901760, %v614_v36 }
  0x76   :  { %8500 = vmatpush3.bf16.msra.mxu0 %v9448_v21  ;;  %v208_v37 = vand.u32 4294901760, %v207_v29  ;;  %v215_v38 = vand.u32 4294901760, %v214_v30  ;;  %8533 = vmatpush3.bf16.msra.mxu1 %v9475_v34  ;;  %v9490_v50 = vsub.f32 %v613_v35, %v629_v45  ;;  %v620_v52 = vsel %vm120_vm1, %v610_v47, 0  ;;  %v1108_v29 = vld [vmem:[#allocation10 + $0x8] sm:$0xff] }
  0x77   :  { %v196_v39 = vsub.f32 %v9458_v26, %v195_v32  ;;  %8501 = vmatprep.subr.bf16.mxu0 %v9293_v0  ;;  %v222_v40 = vand.u32 4294901760, %v221_v31  ;;  %v229_v44 = vand.u32 4294901760, %v228_v33  ;;  %8534 = vmatprep.subr.bf16.mxu1 %v9293_v0  ;;  %v9488_v49 = vpack.c.bf16 %v632_v46, %v629_v45 }
  0x78   :  { %v8502_v43 = vpack.c.bf16 %v215_v38, %v208_v37  ;;  %v9492_v51 = vsub.f32 %v614_v36, %v632_v46  ;;  %v704_v53 = vand.u32 4294901760, %v9483_v41  ;;  %v711_v54 = vand.u32 4294901760, %v9485_v42 }
  0x79   :  { %v197_v48 = vand.u32 4294901760, %v196_v39  ;;  %v8505_v55 = vpack.c.bf16 %v229_v44, %v222_v40  ;;  %v9499_v56 = vand.u32 4294901760, %v620_v52  ;;  %v718_v57 = vand.u32 4294901760, %v9490_v50 }
  0x7a   :  { %8536 = vmatpush3.bf16.msra.mxu1 %v9488_v49  ;;  %v705_v58 = vsub.f32 %v9483_v41, %v704_v53  ;;  %v712_v59 = vsub.f32 %v9485_v42, %v711_v54  ;;  %v725_v60 = vand.u32 4294901760, %v9492_v51  ;;  %v8508_v4 = vpack.c.bf16 %v9439_v15, %v9437_v14 }
  0x7b   :  { %7652 = vmatmul.mubr.f32.vlgmr.msra.gmra.mrb[0].mxu0 %v197_v48  ;;  %v9512_v61 = vsub.f32 %v620_v52, %v9499_v56  ;;  %8537 = vmatprep.subr.bf16.mxu1 %v9293_v0  ;;  %v719_v2 = vsub.f32 %v9490_v50, %v718_v57  ;;  %v8511_v10 = vpack.c.bf16 %v9443_v18, %v9441_v16  ;;  %v1115_v14 = vand.u32 4294901760, %v1107_v28 }
  0x7c   :  { %8503 = vmatpush3.bf16.msra.mxu0 %v8502_v43  ;;  %7662 = vmatprep.mubr.msk.f32.mxu0 %vm9294_vm0, %v9295_v1  ;;  %v706_v62 = vand.u32 4294901760, %v705_v58  ;;  %v713_v63 = vand.u32 4294901760, %v712_v59  ;;  %v726_v3 = vsub.f32 %v9492_v51, %v725_v60  ;;  %v8544_v17 = vpack.c.bf16 %v9485_v42, %v9483_v41  ;;  %v7249_v59 = vld [vmem:[%s10290_s6] ss:$0 sm:$0xff] }
  0x7d   :  { %8504 = vmatprep.subr.bf16.mxu0 %v9293_v0  ;;  %v693_v5 = vand.u32 4294901760, %v9512_v61  ;;  %v720_v8 = vand.u32 4294901760, %v719_v2  ;;  %v8547_v20 = vpack.c.bf16 %v9492_v51, %v9490_v50  ;;  %v8520_v25 = vpack.c.bf16 %v213_v23, %v206_v22  ;;  %v1109_v22 = vld [vmem:[#allocation10 + $0x10] sm:$0xff]  ;;  %v1110_v23 = vld [vmem:[#allocation10 + $0x18] sm:$0xff] }
  0x7e   :  { %v8538_v7 = vpack.c.bf16 %v713_v63, %v706_v62  ;;  %v727_v9 = vand.u32 4294901760, %v726_v3  ;;  %v8523_v30 = vpack.c.bf16 %v227_v27, %v220_v24  ;;  %v1118_v15 = vand.u32 4294901760, %v1108_v29 }
  0x7f   :  { %v694_v6 = vsub.f32 %v9512_v61, %v693_v5  ;;  %v1121_v16 = vand.u32 4294901760, %v1109_v22  ;;  %v1124_v18 = vand.u32 4294901760, %v1110_v23  ;;  %v9572_v24 = vsub.f32 %v1107_v28, %v1115_v14 }
  0x80   :  { %8506 = vmatpush3.bf16.msra.mxu0 %v8505_v55  ;;  %v8541_v12 = vpack.c.bf16 %v727_v9, %v720_v8  ;;  %v8556_v27 = vpack.c.bf16 %v711_v54, %v704_v53  ;;  %v9597_v36 = vpack.c.bf16 %v1118_v15, %v1115_v14  ;;  %vm5303_vm3 = vcmask 1040384  }
  0x81   :  { %8507 = vmatprep.subr.bf16.mxu0 %v9293_v0  ;;  %v695_v11 = vand.u32 4294901760, %v694_v6  ;;  %v1196_v31 = vand.u32 4294901760, %v9572_v24  ;;  %v9589_v33 = vsub.f32 %v1109_v22, %v1121_v16  ;;  %v9591_v35 = vsub.f32 %v1110_v23, %v1124_v18 }
  0x82   :  { %v9617_v41 = vpack.c.bf16 %v1124_v18, %v1121_v16  ;;  %vm5305_vm4 = vcmask 1041408   ;;  %vm5761_vm5 = vcmask 26624   ;;  %vm5773_vm6 = vcmask 31744  }
  0x83   :  { %7663 = vmatmul.mubr.f32.vlgmr.msra.gmra.mrb[0].mxu0 %v9445_v19  ;;  %7718 = vmatmul.mubr.f32.vlgmr.msra.gmra.mrb[0].mxu1 %v695_v11  ;;  %v1197_v37 = vsub.f32 %v9572_v24, %v1196_v31  ;;  %v1210_v39 = vand.u32 4294901760, %v9589_v33  ;;  %v1217_v40 = vand.u32 4294901760, %v9591_v35  ;;  %v9660_v48 = vpack.c.bf16 %v9591_v35, %v9589_v33 }
  0x84   :  { %8509 = vmatpush3.bf16.msra.mxu0 %v8508_v4  ;;  %7673 = vmatprep.mubr.msk.f32.mxu0 %vm9294_vm0, %v9295_v1  ;;  %vm7215_vm7 = vcmask 1042432  }
  0x85   :  { %8510 = vmatprep.subr.bf16.mxu0 %v9293_v0  ;;  %8539 = vmatpush3.bf16.msra.mxu1 %v8538_v7  ;;  %v1211_v43 = vsub.f32 %v9589_v33, %v1210_v39  ;;  %v1218_v44 = vsub.f32 %v9591_v35, %v1217_v40  ;;  %v9683_v50 = vpack.c.bf16 %v1217_v40, %v1210_v39 }
  0x86   :  { %7728 = vmatprep.mubr.msk.f32.mxu1 %vm9294_vm0, %v9295_v1  ;;  %8540 = vmatprep.subr.bf16.mxu1 %v9293_v0 }
  0x87   :  { %v1212_v45 = vand.u32 4294901760, %v1211_v43  ;;  %v1219_v46 = vand.u32 4294901760, %v1218_v44 }
  0x88   :  { %8512 = vmatpush3.bf16.msra.mxu0 %v8511_v10 }
  0x89   :  { %8513 = vmatprep.subr.bf16.mxu0 %v9293_v0  ;;  %8542 = vmatpush3.bf16.msra.mxu1 %v8541_v12 }
  0x8a   :  { %8543 = vmatprep.subr.bf16.mxu1 %v9293_v0 }
  0x8b   :  { %7674 = vmatmul.mubr.f32.vlgmr.msra.gmra.mrb[0].mxu0 %v9458_v26  ;;  %v9574_v26 = vsub.f32 %v1108_v29, %v1118_v15 }
  0x8c   :  { %8515 = vmatpush3.bf16.msra.mxu0 %v9435_v13  ;;  %7684 = vmatprep.mubr.msk.f32.mxu0 %vm9294_vm0, %v9295_v1 }
  0x8d   :  { %8516 = vmatprep.subr.bf16.mxu0 %v9293_v0  ;;  %7729 = vmatmul.mubr.f32.vlgmr.msra.gmra.mrb[0].mxu1 %v9499_v56  ;;  %v9651_v47 = vpack.c.bf16 %v9574_v26, %v9572_v24 }
  0x8e   :  { %8545 = vmatpush3.bf16.msra.mxu1 %v8544_v17  ;;  %7739 = vmatprep.mubr.msk.f32.mxu1 %vm9294_vm0, %v9295_v1 }
  0x8f   :  { %8546 = vmatprep.subr.bf16.mxu1 %v9293_v0 }
  0x90   :  { %8518 = vmatpush3.bf16.msra.mxu0 %v9448_v21 }
  0x91   :  { %8519 = vmatprep.subr.bf16.mxu0 %v9293_v0 }
  0x92   :  { %8548 = vmatpush3.bf16.msra.mxu1 %v8547_v20 }
  0x93   :  { %7685 = vmatmul.mubr.f32.vlgmr.msra.gmra.mrb[0].mxu0 %v195_v32  ;;  %8549 = vmatprep.subr.bf16.mxu1 %v9293_v0  ;;  %v1203_v32 = vand.u32 4294901760, %v9574_v26 }
  0x94   :  { %8521 = vmatpush3.bf16.msra.mxu0 %v8520_v25  ;;  %7695 = vmatprep.mubr.msk.f32.mxu0 %vm9294_vm0, %v9295_v1 }
  0x95   :  { %8522 = vmatprep.subr.bf16.mxu0 %v9293_v0  ;;  %7740 = vmatmul.mubr.f32.vlgmr.msra.gmra.mrb[0].mxu1 %v9512_v61  ;;  %v1204_v38 = vsub.f32 %v9574_v26, %v1203_v32 }
  0x96   :  { %8551 = vmatpush3.bf16.msra.mxu1 %v9475_v34  ;;  %7750 = vmatprep.mubr.msk.f32.mxu1 %vm9294_vm0, %v9295_v1 }
  0x97   :  { %8552 = vmatprep.subr.bf16.mxu1 %v9293_v0  ;;  %v1205_v42 = vand.u32 4294901760, %v1204_v38 }
  0x98   :  { %8524 = vmatpush3.bf16.msra.mxu0 %v8523_v30 }
  0x99   :  { %8525 = vmatprep.subr.bf16.mxu0 %v9293_v0 }
  0x9a   :  { %8554 = vmatpush3.bf16.msra.mxu1 %v9488_v49 }
  0x9b   :  { %7696 = vmatmul.mubr.f32.vlgmr.msra.gmra.mrb[0].mxu0 %v9445_v19  ;;  %8555 = vmatprep.subr.bf16.mxu1 %v9293_v0 }
  0x9c   :  { %8527 = vmatpush3.bf16.msra.mxu0 %v9435_v13  ;;  %7706 = vmatprep.mubr.msk.f32.mxu0 %vm9294_vm0, %v9295_v1  ;;  %v8559_v13 = vpack.c.bf16 %v725_v60, %v718_v57 }
  0x9d   :  { %8528 = vmatprep.subr.bf16.mxu0 %v9293_v0  ;;  %7751 = vmatmul.mubr.f32.vlgmr.msra.gmra.mrb[0].mxu1 %v693_v5 }
  0x9e   :  { %8557 = vmatpush3.bf16.msra.mxu1 %v8556_v27  ;;  %7761 = vmatprep.mubr.msk.f32.mxu1 %vm9294_vm0, %v9295_v1 }
  0x9f   :  { %8558 = vmatprep.subr.bf16.mxu1 %v9293_v0 }
  0xa0   :  { %8530 = vmatpush3.bf16.msra.mxu0 %v9448_v21  ;;  %v1198_v21 = vand.u32 4294901760, %v1197_v37 }
  0xa1   :  { %8567 = vmatprep.subr.bf16.mxu0 %v9293_v0 }
  0xa2   :  { %8560 = vmatpush3.bf16.msra.mxu1 %v8559_v13 }
  0xa3   :  { %7707 = vmatmul.mubr.f32.vlgmr.msra.gmra.mrb[0].mxu0 %v9445_v19  ;;  %8561 = vmatprep.subr.bf16.mxu1 %v9293_v0  ;;  %v9631_v19 = vpack.c.bf16 %v1205_v42, %v1198_v21 }
  0xa4   :  { %8569 = vmatpush3.bf16.msra.mxu0 %v9597_v36  ;;  %7783 = vmatprep.mubr.msk.f32.mxu0 %vm9294_vm0, %v9295_v1 }
  0xa5   :  { %8570 = vmatprep.subr.bf16.mxu0 %v9293_v0  ;;  %7762 = vmatmul.mubr.f32.vlgmr.msra.gmra.mrb[0].mxu1 %v9499_v56 }
  0xa6   :  { %8563 = vmatpush3.bf16.msra.mxu1 %v9475_v34  ;;  %7772 = vmatprep.mubr.msk.f32.mxu1 %vm9294_vm0, %v9295_v1  ;;  %v9638_v34 = vpack.c.bf16 %v1219_v46, %v1212_v45 }
  0xa7   :  { %8564 = vmatprep.subr.bf16.mxu1 %v9293_v0 }
  0xa8   :  { %8572 = vmatpush3.bf16.msra.mxu0 %v9617_v41 }
  0xa9   :  { %8573 = vmatprep.subr.bf16.mxu0 %v9293_v0 }
  0xaa   :  { %8566 = vmatpush3.bf16.msra.mxu1 %v9488_v49  ;;  %v9678_v49 = vpack.c.bf16 %v1203_v32, %v1196_v31 }
  0xab   :  { %7784 = vmatmul.mubr.f32.vlgmr.msra.gmra.mrb[2].mxu0 %v9295_v1  ;;  %8603 = vmatprep.subr.bf16.mxu1 %v9293_v0 }
  0xac   :  { %8575 = vmatpush3.bf16.msra.mxu0 %v9631_v19  ;;  %7794 = vmatprep.mubr.msk.f32.mxu0 %vm9294_vm0, %v9295_v1 }
  0xad   :  { %8576 = vmatprep.subr.bf16.mxu0 %v9293_v0  ;;  %7773 = vmatmul.mubr.f32.vlgmr.msra.gmra.mrb[0].mxu1 %v9499_v56 }
  0xae   :  { %8605 = vmatpush3.bf16.msra.mxu1 %v9597_v36  ;;  %7849 = vmatprep.mubr.msk.f32.mxu1 %vm9294_vm0, %v9295_v1 }
  0xaf   :  { %8606 = vmatprep.subr.bf16.mxu1 %v9293_v0 }
  0xb0   :  { %8578 = vmatpush3.bf16.msra.mxu0 %v9638_v34 }
  0xb1   :  { %8579 = vmatprep.subr.bf16.mxu0 %v9293_v0 }
  0xb2   :  { %8608 = vmatpush3.bf16.msra.mxu1 %v9617_v41 }
  0xb3   :  { %7795 = vmatmul.mubr.f32.vlgmr.msra.gmra.mrb[2].mxu0 %v9295_v1  ;;  %8609 = vmatprep.subr.bf16.mxu1 %v9293_v0 }
  0xb4   :  { %8581 = vmatpush3.bf16.msra.mxu0 %v9651_v47  ;;  %7805 = vmatprep.mubr.msk.f32.mxu0 %vm9294_vm0, %v9295_v1 }
  0xb5   :  { %8582 = vmatprep.subr.bf16.mxu0 %v9293_v0 }
  0xb8   :  { %8584 = vmatpush3.bf16.msra.mxu0 %v9660_v48 }
  0xb9   :  { %8585 = vmatprep.subr.bf16.mxu0 %v9293_v0 }
  0xbb   :  { %7806 = vmatmul.mubr.f32.vlgmr.msra.gmra.mrb[2].mxu0 %v9295_v1 }
  0xbc   :  { %8587 = vmatpush3.bf16.msra.mxu0 %v9597_v36  ;;  %7816 = vmatprep.mubr.msk.f32.mxu0 %vm9294_vm0, %v9295_v1 }
  0xbd   :  { %8588 = vmatprep.subr.bf16.mxu0 %v9293_v0 }
  0xc0   :  { %8590 = vmatpush3.bf16.msra.mxu0 %v9617_v41 }
  0xc1   :  { %8591 = vmatprep.subr.bf16.mxu0 %v9293_v0 }
  0xc3   :  { %7817 = vmatmul.mubr.f32.vlgmr.msra.gmra.mrb[2].mxu0 %v9295_v1 }
  0xc4   :  { %8593 = vmatpush3.bf16.msra.mxu0 %v9678_v49  ;;  %7827 = vmatprep.mubr.msk.f32.mxu0 %vm9294_vm0, %v9295_v1 }
  0xc5   :  { %8594 = vmatprep.subr.bf16.mxu0 %v9293_v0 }
  0xc8   :  { %8596 = vmatpush3.bf16.msra.mxu0 %v9683_v50 }
  0xc9   :  { %8597 = vmatprep.subr.bf16.mxu0 %v9293_v0 }
  0xcb   :  { %7828 = vmatmul.mubr.f32.vlgmr.msra.gmra.mrb[2].mxu0 %v9295_v1 }
  0xcc   :  { %8599 = vmatpush3.bf16.msra.mxu0 %v9597_v36  ;;  %7838 = vmatprep.mubr.msk.f32.mxu0 %vm9294_vm0, %v9295_v1 }
  0xcd   :  { %8600 = vmatprep.subr.bf16.mxu0 %v9293_v0 }
  0xd0   :  { %8602 = vmatpush3.bf16.msra.mxu0 %v9617_v41 }
  0xd1   :  { %8639 = vmatprep.subr.bf16.mxu0 %v9293_v0 }
  0xd3   :  { %7839 = vmatmul.mubr.f32.vlgmr.msra.gmra.mrb[2].mxu0 %v9295_v1 }
  0xd4   :  { %8641 = vmatpush3.bf16.msra.mxu0 %v9597_v36  ;;  %7915 = vmatprep.mubr.msk.f32.mxu0 %vm9294_vm0, %v9295_v1 }
  0xd5   :  { %8642 = vmatprep.subr.bf16.mxu0 %v9293_v0 }
  0xd8   :  { %8644 = vmatpush3.bf16.msra.mxu0 %v9617_v41 }
  0xd9   :  { %8645 = vmatprep.subr.bf16.mxu0 %v9293_v0 }
  0xe2   :  { %v9706_v55 = vpop.permute.xlu0 %1607 }
 0x176   :  { %v9704_v51 = vpop.f32.mrb[0].mxu0 }
 0x177   :  { %v7708_v52 = vpop.f32.mrb[1].mxu0 }
 0x180   :  { %v1103_v53 = vpop.f32.mrb[0].mxu1 }
 0x181   :  { %v7774_v54 = vpop.f32.mrb[1].mxu1  ;;  %v9713_v60 = vadd.f32 %v7249_v59, %v1103_v53 }
 0x1a6   :  { %v1595_v56 = vpop.f32.mrb[2].mxu0 }
 0x1a7   :  { %v7840_v57 = vpop.f32.mrb[3].mxu0  ;;  %v1610_v58 = vadd.f32 %v9706_v55, %v1595_v56  ;;  %v1599_v61 = vadd.f32 %v9713_v60, %v1595_v56 }
 0x1a9   :  { %1612 = vrot.lane.b32.xlu0 %v1610_v58, %s9296_s29  ;;  %v7250_v62 = vmul.f32 -1.442695, %v1599_v61 }
 0x1ab   :  { %9063 = vpow2.f32 %v7250_v62 }
 0x1b5   :  { %v9064_v63 = vpop.eup %9063 }
 0x1b6   :  { %v1603_v2 = vadd.f32 1.0, %v9064_v63 }
 0x1b8   :  { %9065 = vrcp.f32 %v1603_v2 }
 0x1c2   :  { %v9066_v3 = vpop.eup %9065 }
 0x1c3   :  { %v1622_v9 = vsub.f32 1.0, %v9066_v3  ;;  %v1628_v11 = vmul.f32 0.0, %v9066_v3 }
 0x21b   :  { %v1613_v4 = vpop.permute.xlu0 %1612 }
 0x21c   :  { %v1615_v5 = vmul.f32 %v9066_v3, %v1613_v4 }
 0x21e   :  { %1617 = vrot.lane.b32.xlu1 %v1615_v5, %s9296_s29 }
 0x290   :  { %v1618_v6 = vpop.permute.xlu1 %1617 }
 0x291   :  { %v1620_v7 = vadd.f32 %v9713_v60, %v1618_v6 }
 0x293   :  { %9067 = vtanh.f32 %v1620_v7 }
 0x29d   :  { %v9068_v8 = vpop.eup %9067 }
 0x29e   :  { %1624 = vrot.lane.b32.xlu1 %v9068_v8, %s9297_s10 }
 0x310   :  { %v1625_v10 = vpop.permute.xlu1 %1624 }
 0x311   :  { %v1627_v12 = vmul.f32 %v1625_v10, %v1622_v9 }
 0x313   :  { %v9719_v17 = vadd.f32 %v1628_v11, %v1627_v12 }
 0x315   :  { %1631 = vrot.lane.b32.xlu0 %v9719_v17, %s9297_s10  ;;  %v2149_v40 = vrot.slane %v9719_v17, 7 }
 0x387   :  { %v1632_v20 = vpop.permute.xlu0 %1631 }
 0x388   :  { %v1633_v25 = vsel %vm120_vm1, %v1632_v20, 0 }
 0x389   :  { %v1704_v28 = vand.u32 4294901760, %v1633_v25 }
 0x38b   :  { %v1705_v29 = vsub.f32 %v1633_v25, %v1704_v28 }
 0x38d   :  { %v1706_v30 = vand.u32 4294901760, %v1705_v29 }
 0x38f   :  { %v1707_v14 = vsub.f32 %v1705_v29, %v1706_v30 }
 0x391   :  { %v1708_v15 = vand.u32 4294901760, %v1707_v14 }
 0x393   :  { %7850 = vmatmul.mubr.f32.vlgmr.msra.gmra.mrb[2].mxu1 %v1708_v15 }
 0x394   :  { %8611 = vmatpush3.bf16.msra.mxu1 %v9631_v19  ;;  %7860 = vmatprep.mubr.msk.f32.mxu1 %vm9294_vm0, %v9295_v1 }
 0x395   :  { %8612 = vmatprep.subr.bf16.mxu1 %v9293_v0 }
 0x398   :  { %8614 = vmatpush3.bf16.msra.mxu1 %v9638_v34 }
 0x399   :  { %8615 = vmatprep.subr.bf16.mxu1 %v9293_v0 }
 0x39b   :  { %7861 = vmatmul.mubr.f32.vlgmr.msra.gmra.mrb[2].mxu1 %v1704_v28 }
 0x39c   :  { %8617 = vmatpush3.bf16.msra.mxu1 %v9651_v47  ;;  %7871 = vmatprep.mubr.msk.f32.mxu1 %vm9294_vm0, %v9295_v1 }
 0x39d   :  { %8618 = vmatprep.subr.bf16.mxu1 %v9293_v0 }
 0x3a0   :  { %8620 = vmatpush3.bf16.msra.mxu1 %v9660_v48 }
 0x3a1   :  { %8621 = vmatprep.subr.bf16.mxu1 %v9293_v0 }
 0x3a3   :  { %7872 = vmatmul.mubr.f32.vlgmr.msra.gmra.mrb[2].mxu1 %v1705_v29 }
 0x3a4   :  { %8623 = vmatpush3.bf16.msra.mxu1 %v9597_v36  ;;  %7882 = vmatprep.mubr.msk.f32.mxu1 %vm9294_vm0, %v9295_v1 }
 0x3a5   :  { %8624 = vmatprep.subr.bf16.mxu1 %v9293_v0 }
 0x3a8   :  { %8626 = vmatpush3.bf16.msra.mxu1 %v9617_v41 }
 0x3a9   :  { %8627 = vmatprep.subr.bf16.mxu1 %v9293_v0 }
 0x3ab   :  { %7883 = vmatmul.mubr.f32.vlgmr.msra.gmra.mrb[2].mxu1 %v1706_v30 }
 0x3ac   :  { %8629 = vmatpush3.bf16.msra.mxu1 %v9678_v49  ;;  %7893 = vmatprep.mubr.msk.f32.mxu1 %vm9294_vm0, %v9295_v1 }
 0x3ad   :  { %8630 = vmatprep.subr.bf16.mxu1 %v9293_v0 }
 0x3b0   :  { %8632 = vmatpush3.bf16.msra.mxu1 %v9683_v50 }
 0x3b1   :  { %8633 = vmatprep.subr.bf16.mxu1 %v9293_v0 }
 0x3b3   :  { %7894 = vmatmul.mubr.f32.vlgmr.msra.gmra.mrb[2].mxu1 %v1704_v28 }
 0x3b4   :  { %8635 = vmatpush3.bf16.msra.mxu1 %v9597_v36  ;;  %7904 = vmatprep.mubr.msk.f32.mxu1 %vm9294_vm0, %v9295_v1 }
 0x3b5   :  { %8636 = vmatprep.subr.bf16.mxu1 %v9293_v0 }
 0x3b8   :  { %8638 = vmatpush3.bf16.msra.mxu1 %v9617_v41 }
 0x3b9   :  { %8675 = vmatprep.subr.bf16.mxu1 %v9293_v0 }
 0x3bb   :  { %7905 = vmatmul.mubr.f32.vlgmr.msra.gmra.mrb[2].mxu1 %v1704_v28 }
 0x3bc   :  { %8677 = vmatpush3.bf16.msra.mxu1 %v9597_v36  ;;  %7981 = vmatprep.mubr.msk.f32.mxu1 %vm9294_vm0, %v9295_v1 }
 0x3bd   :  { %8678 = vmatprep.subr.bf16.mxu1 %v9293_v0 }
 0x3c0   :  { %8680 = vmatpush3.bf16.msra.mxu1 %v9617_v41 }
 0x3c1   :  { %8681 = vmatprep.subr.bf16.mxu1 %v9293_v0 }
 0x48e   :  { %v2116_v22 = vpop.f32.mrb[2].mxu1 }
 0x48f   :  { %v2130_v23 = vadd.f32 %v2116_v22, %v9706_v55  ;;  %v7906_v16 = vpop.f32.mrb[3].mxu1  ;;  %v2121_v24 = vrot.slane %v2116_v22, 7 }
 0x491   :  { %v2132_v18 = vrot.slane %v2130_v23, 7  ;;  %v2123_v26 = vadd.f32 %v9713_v60, %v2121_v24 }
 0x493   :  { %2133 = vrot.lane.b32.xlu1 %v2132_v18, %s9296_s29  ;;  %v7251_v27 = vmul.f32 -1.442695, %v2123_v26 }
 0x495   :  { %9069 = vpow2.f32 %v7251_v27 }
 0x49f   :  { %v9070_v31 = vpop.eup %9069 }
 0x4a0   :  { %v2127_v32 = vadd.f32 1.0, %v9070_v31 }
 0x4a2   :  { %9071 = vrcp.f32 %v2127_v32 }
 0x4ac   :  { %v9072_v33 = vpop.eup %9071 }
 0x4ad   :  { %v2143_v21 = vsub.f32 1.0, %v9072_v33  ;;  %v2151_v44 = vmul.f32 %v9072_v33, %v2149_v40 }
 0x505   :  { %v2134_v35 = vpop.permute.xlu1 %2133 }
 0x506   :  { %v2136_v13 = vmul.f32 %v9072_v33, %v2134_v35 }
 0x508   :  { %2138 = vrot.lane.b32.xlu0 %v2136_v13, %s9296_s29 }
 0x57a   :  { %v2139_v37 = vpop.permute.xlu0 %2138 }
 0x57b   :  { %v2141_v38 = vadd.f32 %v9713_v60, %v2139_v37 }
 0x57d   :  { %9073 = vtanh.f32 %v2141_v38 }
 0x587   :  { %v9074_v39 = vpop.eup %9073 }
 0x588   :  { %2145 = vrot.lane.b32.xlu1 %v9074_v39, %s9297_s10 }
 0x5fa   :  { %v2146_v42 = vpop.permute.xlu1 %2145 }
 0x5fb   :  { %v2148_v43 = vmul.f32 %v2146_v42, %v2143_v21 }
 0x5fd   :  { %v9767_v45 = vadd.f32 %v2151_v44, %v2148_v43 }
 0x5ff   :  { %v2154_v46 = vrot.slane %v9767_v45, 1  ;;  %v2673_v20 = vrot.slane %v9767_v45, 7 }
 0x601   :  { %2155 = vrot.lane.b32.xlu0 %v2154_v46, %s9297_s10 }
 0x673   :  { %v2156_v52 = vpop.permute.xlu0 %2155 }
 0x674   :  { %v2157_v53 = vsel %vm120_vm1, %v2156_v52, 0 }
 0x675   :  { %v2228_v54 = vand.u32 4294901760, %v2157_v53 }
 0x677   :  { %v2229_v56 = vsub.f32 %v2157_v53, %v2228_v54 }
 0x679   :  { %v2230_v57 = vand.u32 4294901760, %v2229_v56 }
 0x67b   :  { %v2231_v58 = vsub.f32 %v2229_v56, %v2230_v57 }
 0x67d   :  { %v2232_v59 = vand.u32 4294901760, %v2231_v58 }
 0x67f   :  { %7916 = vmatmul.mubr.f32.vlgmr.msra.gmra.mrb[4].mxu0 %v2232_v59 }
 0x680   :  { %8647 = vmatpush3.bf16.msra.mxu0 %v9631_v19  ;;  %7926 = vmatprep.mubr.msk.f32.mxu0 %vm9294_vm0, %v9295_v1 }
 0x681   :  { %8648 = vmatprep.subr.bf16.mxu0 %v9293_v0 }
 0x684   :  { %8650 = vmatpush3.bf16.msra.mxu0 %v9638_v34 }
 0x685   :  { %8651 = vmatprep.subr.bf16.mxu0 %v9293_v0 }
 0x687   :  { %7927 = vmatmul.mubr.f32.vlgmr.msra.gmra.mrb[4].mxu0 %v2228_v54 }
 0x688   :  { %8653 = vmatpush3.bf16.msra.mxu0 %v9651_v47  ;;  %7937 = vmatprep.mubr.msk.f32.mxu0 %vm9294_vm0, %v9295_v1 }
 0x689   :  { %8654 = vmatprep.subr.bf16.mxu0 %v9293_v0 }
 0x68c   :  { %8656 = vmatpush3.bf16.msra.mxu0 %v9660_v48 }
 0x68d   :  { %8657 = vmatprep.subr.bf16.mxu0 %v9293_v0 }
 0x68f   :  { %7938 = vmatmul.mubr.f32.vlgmr.msra.gmra.mrb[4].mxu0 %v2229_v56 }
 0x690   :  { %8659 = vmatpush3.bf16.msra.mxu0 %v9597_v36  ;;  %7948 = vmatprep.mubr.msk.f32.mxu0 %vm9294_vm0, %v9295_v1 }
 0x691   :  { %8660 = vmatprep.subr.bf16.mxu0 %v9293_v0 }
 0x694   :  { %8662 = vmatpush3.bf16.msra.mxu0 %v9617_v41 }
 0x695   :  { %8663 = vmatprep.subr.bf16.mxu0 %v9293_v0 }
 0x697   :  { %7949 = vmatmul.mubr.f32.vlgmr.msra.gmra.mrb[4].mxu0 %v2230_v57 }
 0x698   :  { %8665 = vmatpush3.bf16.msra.mxu0 %v9678_v49  ;;  %7959 = vmatprep.mubr.msk.f32.mxu0 %vm9294_vm0, %v9295_v1 }
 0x699   :  { %8666 = vmatprep.subr.bf16.mxu0 %v9293_v0 }
 0x69c   :  { %8668 = vmatpush3.bf16.msra.mxu0 %v9683_v50 }
 0x69d   :  { %8669 = vmatprep.subr.bf16.mxu0 %v9293_v0 }
 0x69f   :  { %7960 = vmatmul.mubr.f32.vlgmr.msra.gmra.mrb[4].mxu0 %v2228_v54 }
 0x6a0   :  { %8671 = vmatpush3.bf16.msra.mxu0 %v9597_v36  ;;  %7970 = vmatprep.mubr.msk.f32.mxu0 %vm9294_vm0, %v9295_v1 }
 0x6a1   :  { %8672 = vmatprep.subr.bf16.mxu0 %v9293_v0 }
 0x6a4   :  { %8674 = vmatpush3.bf16.msra.mxu0 %v9617_v41 }
 0x6a5   :  { %8711 = vmatprep.subr.bf16.mxu0 %v9293_v0 }
 0x6a7   :  { %7971 = vmatmul.mubr.f32.vlgmr.msra.gmra.mrb[4].mxu0 %v2228_v54 }
 0x6a8   :  { %8713 = vmatpush3.bf16.msra.mxu0 %v9597_v36  ;;  %8047 = vmatprep.mubr.msk.f32.mxu0 %vm9294_vm0, %v9295_v1 }
 0x6a9   :  { %8714 = vmatprep.subr.bf16.mxu0 %v9293_v0 }
 0x6ac   :  { %8716 = vmatpush3.bf16.msra.mxu0 %v9617_v41 }
 0x6ad   :  { %8717 = vmatprep.subr.bf16.mxu0 %v9293_v0 }
 0x77a   :  { %v2640_v61 = vpop.f32.mrb[4].mxu0 }
 0x77b   :  { %v2654_v62 = vadd.f32 %v2640_v61, %v9706_v55  ;;  %v7972_v63 = vpop.f32.mrb[5].mxu0  ;;  %v2645_v3 = vrot.slane %v2640_v61, 6 }
 0x77d   :  { %v2656_v2 = vrot.slane %v2654_v62, 6  ;;  %v2647_v4 = vadd.f32 %v9713_v60, %v2645_v3 }
 0x77f   :  { %2657 = vrot.lane.b32.xlu1 %v2656_v2, %s9296_s29  ;;  %v7252_v5 = vmul.f32 -1.442695, %v2647_v4 }
 0x781   :  { %9075 = vpow2.f32 %v7252_v5 }
 0x78b   :  { %v9076_v6 = vpop.eup %9075 }
 0x78c   :  { %v2651_v7 = vadd.f32 1.0, %v9076_v6 }
 0x78e   :  { %9077 = vrcp.f32 %v2651_v7 }
 0x798   :  { %v9078_v8 = vpop.eup %9077 }
 0x799   :  { %v2667_v25 = vsub.f32 1.0, %v9078_v8  ;;  %v2675_v29 = vmul.f32 %v9078_v8, %v2673_v20 }
 0x7f1   :  { %v2658_v9 = vpop.permute.xlu1 %2657 }
 0x7f2   :  { %v2660_v10 = vmul.f32 %v9078_v8, %v2658_v9 }
 0x7f4   :  { %2662 = vrot.lane.b32.xlu0 %v2660_v10, %s9296_s29 }
 0x866   :  { %v2663_v11 = vpop.permute.xlu0 %2662 }
 0x867   :  { %v2665_v12 = vadd.f32 %v9713_v60, %v2663_v11 }
 0x869   :  { %9079 = vtanh.f32 %v2665_v12 }
 0x873   :  { %v9080_v17 = vpop.eup %9079 }
 0x874   :  { %2669 = vrot.lane.b32.xlu1 %v9080_v17, %s9297_s10 }
 0x8e6   :  { %v2670_v28 = vpop.permute.xlu1 %2669 }
 0x8e7   :  { %v2672_v30 = vmul.f32 %v2670_v28, %v2667_v25 }
 0x8e9   :  { %v9815_v14 = vadd.f32 %v2675_v29, %v2672_v30 }
 0x8eb   :  { %v2678_v15 = vrot.slane %v9815_v14, 2  ;;  %v3197_v52 = vrot.slane %v9815_v14, 7 }
 0x8ed   :  { %2679 = vrot.lane.b32.xlu0 %v2678_v15, %s9297_s10 }
 0x95f   :  { %v2680_v22 = vpop.permute.xlu0 %2679 }
 0x960   :  { %v2681_v23 = vsel %vm120_vm1, %v2680_v22, 0 }
 0x961   :  { %v2752_v16 = vand.u32 4294901760, %v2681_v23 }
 0x963   :  { %v2753_v18 = vsub.f32 %v2681_v23, %v2752_v16 }
 0x965   :  { %v2754_v24 = vand.u32 4294901760, %v2753_v18 }
 0x967   :  { %v2755_v26 = vsub.f32 %v2753_v18, %v2754_v24 }
 0x969   :  { %v2756_v27 = vand.u32 4294901760, %v2755_v26 }
 0x96b   :  { %7982 = vmatmul.mubr.f32.vlgmr.msra.gmra.mrb[4].mxu1 %v2756_v27 }
 0x96c   :  { %8683 = vmatpush3.bf16.msra.mxu1 %v9631_v19  ;;  %7992 = vmatprep.mubr.msk.f32.mxu1 %vm9294_vm0, %v9295_v1 }
 0x96d   :  { %8684 = vmatprep.subr.bf16.mxu1 %v9293_v0 }
 0x970   :  { %8686 = vmatpush3.bf16.msra.mxu1 %v9638_v34 }
 0x971   :  { %8687 = vmatprep.subr.bf16.mxu1 %v9293_v0 }
 0x973   :  { %7993 = vmatmul.mubr.f32.vlgmr.msra.gmra.mrb[4].mxu1 %v2752_v16 }
 0x974   :  { %8689 = vmatpush3.bf16.msra.mxu1 %v9651_v47  ;;  %8003 = vmatprep.mubr.msk.f32.mxu1 %vm9294_vm0, %v9295_v1 }
 0x975   :  { %8690 = vmatprep.subr.bf16.mxu1 %v9293_v0 }
 0x978   :  { %8692 = vmatpush3.bf16.msra.mxu1 %v9660_v48 }
 0x979   :  { %8693 = vmatprep.subr.bf16.mxu1 %v9293_v0 }
 0x97b   :  { %8004 = vmatmul.mubr.f32.vlgmr.msra.gmra.mrb[4].mxu1 %v2753_v18 }
 0x97c   :  { %8695 = vmatpush3.bf16.msra.mxu1 %v9597_v36  ;;  %8014 = vmatprep.mubr.msk.f32.mxu1 %vm9294_vm0, %v9295_v1 }
 0x97d   :  { %8696 = vmatprep.subr.bf16.mxu1 %v9293_v0 }
 0x980   :  { %8698 = vmatpush3.bf16.msra.mxu1 %v9617_v41 }
 0x981   :  { %8699 = vmatprep.subr.bf16.mxu1 %v9293_v0 }
 0x983   :  { %8015 = vmatmul.mubr.f32.vlgmr.msra.gmra.mrb[4].mxu1 %v2754_v24 }
 0x984   :  { %8701 = vmatpush3.bf16.msra.mxu1 %v9678_v49  ;;  %8025 = vmatprep.mubr.msk.f32.mxu1 %vm9294_vm0, %v9295_v1 }
 0x985   :  { %8702 = vmatprep.subr.bf16.mxu1 %v9293_v0 }
 0x988   :  { %8704 = vmatpush3.bf16.msra.mxu1 %v9683_v50 }
 0x989   :  { %8705 = vmatprep.subr.bf16.mxu1 %v9293_v0 }
 0x98b   :  { %8026 = vmatmul.mubr.f32.vlgmr.msra.gmra.mrb[4].mxu1 %v2752_v16 }
 0x98c   :  { %8707 = vmatpush3.bf16.msra.mxu1 %v9597_v36  ;;  %8036 = vmatprep.mubr.msk.f32.mxu1 %vm9294_vm0, %v9295_v1 }
 0x98d   :  { %8708 = vmatprep.subr.bf16.mxu1 %v9293_v0 }
 0x990   :  { %8710 = vmatpush3.bf16.msra.mxu1 %v9617_v41 }
 0x991   :  { %8747 = vmatprep.subr.bf16.mxu1 %v9293_v0 }
 0x993   :  { %8037 = vmatmul.mubr.f32.vlgmr.msra.gmra.mrb[4].mxu1 %v2752_v16 }
 0x994   :  { %8749 = vmatpush3.bf16.msra.mxu1 %v9597_v36  ;;  %8113 = vmatprep.mubr.msk.f32.mxu1 %vm9294_vm0, %v9295_v1 }
 0x995   :  { %8750 = vmatprep.subr.bf16.mxu1 %v9293_v0 }
 0x998   :  { %8752 = vmatpush3.bf16.msra.mxu1 %v9617_v41 }
 0x999   :  { %8753 = vmatprep.subr.bf16.mxu1 %v9293_v0 }
 0xa66   :  { %v3164_v31 = vpop.f32.mrb[4].mxu1 }
 0xa67   :  { %v3178_v32 = vadd.f32 %v3164_v31, %v9706_v55  ;;  %v8038_v33 = vpop.f32.mrb[5].mxu1  ;;  %v3169_v13 = vrot.slane %v3164_v31, 5 }
 0xa69   :  { %v3180_v35 = vrot.slane %v3178_v32, 5  ;;  %v3171_v37 = vadd.f32 %v9713_v60, %v3169_v13 }
 0xa6b   :  { %3181 = vrot.lane.b32.xlu1 %v3180_v35, %s9296_s29  ;;  %v7253_v38 = vmul.f32 -1.442695, %v3171_v37 }
 0xa6d   :  { %9081 = vpow2.f32 %v7253_v38 }
 0xa77   :  { %v9082_v39 = vpop.eup %9081 }
 0xa78   :  { %v3175_v40 = vadd.f32 1.0, %v9082_v39 }
 0xa7a   :  { %9083 = vrcp.f32 %v3175_v40 }
 0xa84   :  { %v9084_v21 = vpop.eup %9083 }
 0xa85   :  { %v3191_v53 = vsub.f32 1.0, %v9084_v21  ;;  %v3199_v56 = vmul.f32 %v9084_v21, %v3197_v52 }
 0xadd   :  { %v3182_v42 = vpop.permute.xlu1 %3181 }
 0xade   :  { %v3184_v43 = vmul.f32 %v9084_v21, %v3182_v42 }
 0xae0   :  { %3186 = vrot.lane.b32.xlu0 %v3184_v43, %s9296_s29 }
 0xb52   :  { %v3187_v44 = vpop.permute.xlu0 %3186 }
 0xb53   :  { %v3189_v45 = vadd.f32 %v9713_v60, %v3187_v44 }
 0xb55   :  { %9085 = vtanh.f32 %v3189_v45 }
 0xb5f   :  { %v9086_v46 = vpop.eup %9085 }
 0xb60   :  { %3193 = vrot.lane.b32.xlu1 %v9086_v46, %s9297_s10 }
 0xbd2   :  { %v3194_v54 = vpop.permute.xlu1 %3193 }
 0xbd3   :  { %v3196_v57 = vmul.f32 %v3194_v54, %v3191_v53 }
 0xbd5   :  { %v9863_v58 = vadd.f32 %v3199_v56, %v3196_v57 }
 0xbd7   :  { %v3202_v59 = vrot.slane %v9863_v58, 3  ;;  %v3721_v22 = vrot.slane %v9863_v58, 7 }
 0xbd9   :  { %3203 = vrot.lane.b32.xlu0 %v3202_v59, %s9297_s10 }
 0xc4b   :  { %v3204_v61 = vpop.permute.xlu0 %3203 }
 0xc4c   :  { %v3205_v62 = vsel %vm120_vm1, %v3204_v61, 0 }
 0xc4d   :  { %v3276_v63 = vand.u32 4294901760, %v3205_v62 }
 0xc4f   :  { %v3277_v2 = vsub.f32 %v3205_v62, %v3276_v63 }
 0xc51   :  { %v3278_v3 = vand.u32 4294901760, %v3277_v2 }
 0xc53   :  { %v3279_v4 = vsub.f32 %v3277_v2, %v3278_v3 }
 0xc55   :  { %v3280_v5 = vand.u32 4294901760, %v3279_v4 }
 0xc57   :  { %8048 = vmatmul.mubr.f32.vlgmr.msra.gmra.mrb[6].mxu0 %v3280_v5 }
 0xc58   :  { %8719 = vmatpush3.bf16.msra.mxu0 %v9631_v19  ;;  %8058 = vmatprep.mubr.msk.f32.mxu0 %vm9294_vm0, %v9295_v1 }
 0xc59   :  { %8720 = vmatprep.subr.bf16.mxu0 %v9293_v0 }
 0xc5c   :  { %8722 = vmatpush3.bf16.msra.mxu0 %v9638_v34 }
 0xc5d   :  { %8723 = vmatprep.subr.bf16.mxu0 %v9293_v0 }
 0xc5f   :  { %8059 = vmatmul.mubr.f32.vlgmr.msra.gmra.mrb[6].mxu0 %v3276_v63 }
 0xc60   :  { %8725 = vmatpush3.bf16.msra.mxu0 %v9651_v47  ;;  %8069 = vmatprep.mubr.msk.f32.mxu0 %vm9294_vm0, %v9295_v1 }
 0xc61   :  { %8726 = vmatprep.subr.bf16.mxu0 %v9293_v0 }
 0xc64   :  { %8728 = vmatpush3.bf16.msra.mxu0 %v9660_v48 }
 0xc65   :  { %8729 = vmatprep.subr.bf16.mxu0 %v9293_v0 }
 0xc67   :  { %8070 = vmatmul.mubr.f32.vlgmr.msra.gmra.mrb[6].mxu0 %v3277_v2 }
 0xc68   :  { %8731 = vmatpush3.bf16.msra.mxu0 %v9597_v36  ;;  %8080 = vmatprep.mubr.msk.f32.mxu0 %vm9294_vm0, %v9295_v1 }
 0xc69   :  { %8732 = vmatprep.subr.bf16.mxu0 %v9293_v0 }
 0xc6c   :  { %8734 = vmatpush3.bf16.msra.mxu0 %v9617_v41 }
 0xc6d   :  { %8735 = vmatprep.subr.bf16.mxu0 %v9293_v0 }
 0xc6f   :  { %8081 = vmatmul.mubr.f32.vlgmr.msra.gmra.mrb[6].mxu0 %v3278_v3 }
 0xc70   :  { %8737 = vmatpush3.bf16.msra.mxu0 %v9678_v49  ;;  %8091 = vmatprep.mubr.msk.f32.mxu0 %vm9294_vm0, %v9295_v1 }
 0xc71   :  { %8738 = vmatprep.subr.bf16.mxu0 %v9293_v0 }
 0xc74   :  { %8740 = vmatpush3.bf16.msra.mxu0 %v9683_v50 }
 0xc75   :  { %8741 = vmatprep.subr.bf16.mxu0 %v9293_v0 }
 0xc77   :  { %8092 = vmatmul.mubr.f32.vlgmr.msra.gmra.mrb[6].mxu0 %v3276_v63 }
 0xc78   :  { %8743 = vmatpush3.bf16.msra.mxu0 %v9597_v36  ;;  %8102 = vmatprep.mubr.msk.f32.mxu0 %vm9294_vm0, %v9295_v1 }
 0xc79   :  { %8744 = vmatprep.subr.bf16.mxu0 %v9293_v0 }
 0xc7c   :  { %8746 = vmatpush3.bf16.msra.mxu0 %v9617_v41 }
 0xc7d   :  { %8783 = vmatprep.subr.bf16.mxu0 %v9293_v0 }
 0xc7f   :  { %8103 = vmatmul.mubr.f32.vlgmr.msra.gmra.mrb[6].mxu0 %v3276_v63 }
 0xc80   :  { %8785 = vmatpush3.bf16.msra.mxu0 %v9597_v36  ;;  %8179 = vmatprep.mubr.msk.f32.mxu0 %vm9294_vm0, %v9295_v1 }
 0xc81   :  { %8786 = vmatprep.subr.bf16.mxu0 %v9293_v0 }
 0xc84   :  { %8788 = vmatpush3.bf16.msra.mxu0 %v9617_v41 }
 0xc85   :  { %8789 = vmatprep.subr.bf16.mxu0 %v9293_v0 }
 0xd52   :  { %v3688_v6 = vpop.f32.mrb[6].mxu0 }
 0xd53   :  { %v3702_v7 = vadd.f32 %v3688_v6, %v9706_v55  ;;  %v8104_v8 = vpop.f32.mrb[7].mxu0  ;;  %v3693_v10 = vrot.slane %v3688_v6, 4 }
 0xd55   :  { %v3704_v9 = vrot.slane %v3702_v7, 4  ;;  %v3695_v11 = vadd.f32 %v9713_v60, %v3693_v10 }
 0xd57   :  { %3705 = vrot.lane.b32.xlu1 %v3704_v9, %s9296_s29  ;;  %v7254_v12 = vmul.f32 -1.442695, %v3695_v11 }
 0xd59   :  { %9087 = vpow2.f32 %v7254_v12 }
 0xd63   :  { %v9088_v17 = vpop.eup %9087 }
 0xd64   :  { %v3699_v20 = vadd.f32 1.0, %v9088_v17  ;;  %v7248_v17 = vld [vmem:[%s10290_s6 + $0x2] ss:$0 sm:$0xff] }
 0xd66   :  { %9089 = vrcp.f32 %v3699_v20  ;;  %v8927_v20 = vadd.f32 %v7248_v17, %v9704_v51 }
 0xd70   :  { %v9090_v25 = vpop.eup %9089 }
 0xd71   :  { %v3715_v23 = vsub.f32 1.0, %v9090_v25  ;;  %v3723_v18 = vmul.f32 %v9090_v25, %v3721_v22 }
 0xdc9   :  { %v3706_v28 = vpop.permute.xlu1 %3705 }
 0xdca   :  { %v3708_v29 = vmul.f32 %v9090_v25, %v3706_v28 }
 0xdcc   :  { %3710 = vrot.lane.b32.xlu0 %v3708_v29, %s9296_s29 }
 0xe3e   :  { %v3711_v30 = vpop.permute.xlu0 %3710 }
 0xe3f   :  { %v3713_v14 = vadd.f32 %v9713_v60, %v3711_v30 }
 0xe41   :  { %9091 = vtanh.f32 %v3713_v14 }
 0xe4b   :  { %v9092_v15 = vpop.eup %9091 }
 0xe4c   :  { %3717 = vrot.lane.b32.xlu1 %v9092_v15, %s9297_s10 }
 0xebe   :  { %v3718_v16 = vpop.permute.xlu1 %3717 }
 0xebf   :  { %v3720_v24 = vmul.f32 %v3718_v16, %v3715_v23 }
 0xec1   :  { %v9911_v26 = vadd.f32 %v3723_v18, %v3720_v24 }
 0xec3   :  { %v3726_v27 = vrot.slane %v9911_v26, 4  ;;  %v4245_v61 = vrot.slane %v9911_v26, 7 }
 0xec5   :  { %3727 = vrot.lane.b32.xlu0 %v3726_v27, %s9297_s10 }
 0xf37   :  { %v3728_v31 = vpop.permute.xlu0 %3727 }
 0xf38   :  { %v3729_v32 = vsel %vm120_vm1, %v3728_v31, 0 }
 0xf39   :  { %v3800_v33 = vand.u32 4294901760, %v3729_v32 }
 0xf3b   :  { %v3801_v35 = vsub.f32 %v3729_v32, %v3800_v33 }
 0xf3d   :  { %v3802_v13 = vand.u32 4294901760, %v3801_v35 }
 0xf3f   :  { %v3803_v37 = vsub.f32 %v3801_v35, %v3802_v13 }
 0xf41   :  { %v3804_v38 = vand.u32 4294901760, %v3803_v37 }
 0xf43   :  { %8114 = vmatmul.mubr.f32.vlgmr.msra.gmra.mrb[6].mxu1 %v3804_v38 }
 0xf44   :  { %8755 = vmatpush3.bf16.msra.mxu1 %v9631_v19  ;;  %8124 = vmatprep.mubr.msk.f32.mxu1 %vm9294_vm0, %v9295_v1 }
 0xf45   :  { %8756 = vmatprep.subr.bf16.mxu1 %v9293_v0 }
 0xf48   :  { %8758 = vmatpush3.bf16.msra.mxu1 %v9638_v34 }
 0xf49   :  { %8759 = vmatprep.subr.bf16.mxu1 %v9293_v0 }
 0xf4b   :  { %8125 = vmatmul.mubr.f32.vlgmr.msra.gmra.mrb[6].mxu1 %v3800_v33 }
 0xf4c   :  { %8761 = vmatpush3.bf16.msra.mxu1 %v9651_v47  ;;  %8135 = vmatprep.mubr.msk.f32.mxu1 %vm9294_vm0, %v9295_v1 }
 0xf4d   :  { %8762 = vmatprep.subr.bf16.mxu1 %v9293_v0 }
 0xf50   :  { %8764 = vmatpush3.bf16.msra.mxu1 %v9660_v48 }
 0xf51   :  { %8765 = vmatprep.subr.bf16.mxu1 %v9293_v0 }
 0xf53   :  { %8136 = vmatmul.mubr.f32.vlgmr.msra.gmra.mrb[6].mxu1 %v3801_v35 }
 0xf54   :  { %8767 = vmatpush3.bf16.msra.mxu1 %v9597_v36  ;;  %8146 = vmatprep.mubr.msk.f32.mxu1 %vm9294_vm0, %v9295_v1 }
 0xf55   :  { %8768 = vmatprep.subr.bf16.mxu1 %v9293_v0 }
 0xf58   :  { %8770 = vmatpush3.bf16.msra.mxu1 %v9617_v41 }
 0xf59   :  { %8771 = vmatprep.subr.bf16.mxu1 %v9293_v0 }
 0xf5b   :  { %8147 = vmatmul.mubr.f32.vlgmr.msra.gmra.mrb[6].mxu1 %v3802_v13 }
 0xf5c   :  { %8773 = vmatpush3.bf16.msra.mxu1 %v9678_v49  ;;  %8157 = vmatprep.mubr.msk.f32.mxu1 %vm9294_vm0, %v9295_v1 }
 0xf5d   :  { %8774 = vmatprep.subr.bf16.mxu1 %v9293_v0 }
 0xf60   :  { %8776 = vmatpush3.bf16.msra.mxu1 %v9683_v50 }
 0xf61   :  { %8777 = vmatprep.subr.bf16.mxu1 %v9293_v0 }
 0xf63   :  { %8158 = vmatmul.mubr.f32.vlgmr.msra.gmra.mrb[6].mxu1 %v3800_v33 }
 0xf64   :  { %8779 = vmatpush3.bf16.msra.mxu1 %v9597_v36  ;;  %8168 = vmatprep.mubr.msk.f32.mxu1 %vm9294_vm0, %v9295_v1 }
 0xf65   :  { %8780 = vmatprep.subr.bf16.mxu1 %v9293_v0 }
 0xf68   :  { %8782 = vmatpush3.bf16.msra.mxu1 %v9617_v41 }
 0xf69   :  { %8819 = vmatprep.subr.bf16.mxu1 %v9293_v0 }
 0xf6b   :  { %8169 = vmatmul.mubr.f32.vlgmr.msra.gmra.mrb[6].mxu1 %v3800_v33 }
 0xf6c   :  { %8821 = vmatpush3.bf16.msra.mxu1 %v9597_v36  ;;  %8245 = vmatprep.mubr.msk.f32.mxu1 %vm9294_vm0, %v9295_v1 }
 0xf6d   :  { %8822 = vmatprep.subr.bf16.mxu1 %v9293_v0 }
 0xf70   :  { %8824 = vmatpush3.bf16.msra.mxu1 %v9617_v41 }
 0xf71   :  { %8825 = vmatprep.subr.bf16.mxu1 %v9293_v0 }
0x103e   :  { %v4212_v39 = vpop.f32.mrb[6].mxu1 }
0x103f   :  { %v4226_v40 = vadd.f32 %v4212_v39, %v9706_v55  ;;  %v8170_v21 = vpop.f32.mrb[7].mxu1  ;;  %v4217_v43 = vrot.slane %v4212_v39, 3 }
0x1041   :  { %v4228_v42 = vrot.slane %v4226_v40, 3  ;;  %v4219_v44 = vadd.f32 %v9713_v60, %v4217_v43 }
0x1043   :  { %4229 = vrot.lane.b32.xlu1 %v4228_v42, %s9296_s29  ;;  %v7255_v45 = vmul.f32 -1.442695, %v4219_v44 }
0x1045   :  { %9093 = vpow2.f32 %v7255_v45 }
0x104f   :  { %v9094_v46 = vpop.eup %9093 }
0x1050   :  { %v4223_v52 = vadd.f32 1.0, %v9094_v46 }
0x1052   :  { %9095 = vrcp.f32 %v4223_v52 }
0x105c   :  { %v9096_v53 = vpop.eup %9095 }
0x105d   :  { %v4239_v62 = vsub.f32 1.0, %v9096_v53  ;;  %v4247_v2 = vmul.f32 %v9096_v53, %v4245_v61 }
0x10b5   :  { %v4230_v54 = vpop.permute.xlu1 %4229 }
0x10b6   :  { %v4232_v56 = vmul.f32 %v9096_v53, %v4230_v54 }
0x10b8   :  { %4234 = vrot.lane.b32.xlu0 %v4232_v56, %s9296_s29 }
0x112a   :  { %v4235_v57 = vpop.permute.xlu0 %4234 }
0x112b   :  { %v4237_v58 = vadd.f32 %v9713_v60, %v4235_v57 }
0x112d   :  { %9097 = vtanh.f32 %v4237_v58 }
0x112e   :  { %9099 = vtanh.f32 %v8927_v20 }
0x1137   :  { %v9098_v59 = vpop.eup %9097 }
0x1138   :  { %4241 = vrot.lane.b32.xlu1 %v9098_v59, %s9297_s10  ;;  %v9999_v51 = vpop.eup %9099 }
0x1139   :  { %v10004_v25 = vsel %vm120_vm1, %v9999_v51, 0 }
0x113a   :  { %v10009_v28 = vand.u32 4294901760, %v10004_v25 }
0x113c   :  { %v5393_v20 = vsub.f32 %v10004_v25, %v10009_v28 }
0x11aa   :  { %v4242_v63 = vpop.permute.xlu1 %4241 }
0x11ab   :  { %v4244_v3 = vmul.f32 %v4242_v63, %v4239_v62 }
0x11ad   :  { %v9959_v4 = vadd.f32 %v4247_v2, %v4244_v3 }
0x11af   :  { %v4250_v5 = vrot.slane %v9959_v4, 5  ;;  %v4769_v13 = vrot.slane %v9959_v4, 7 }
0x11b1   :  { %4251 = vrot.lane.b32.xlu0 %v4250_v5, %s9297_s10 }
0x1223   :  { %v4252_v6 = vpop.permute.xlu0 %4251 }
0x1224   :  { %v4253_v7 = vsel %vm120_vm1, %v4252_v6, 0 }
0x1225   :  { %v4324_v8 = vand.u32 4294901760, %v4253_v7 }
0x1227   :  { %v4325_v9 = vsub.f32 %v4253_v7, %v4324_v8 }
0x1229   :  { %v4326_v10 = vand.u32 4294901760, %v4325_v9 }
0x122b   :  { %v4327_v11 = vsub.f32 %v4325_v9, %v4326_v10 }
0x122d   :  { %v4328_v12 = vand.u32 4294901760, %v4327_v11 }
0x122f   :  { %8180 = vmatmul.mubr.f32.vlgmr.msra.gmra.mrb[8].mxu0 %v4328_v12 }
0x1230   :  { %8791 = vmatpush3.bf16.msra.mxu0 %v9631_v19  ;;  %8190 = vmatprep.mubr.msk.f32.mxu0 %vm9294_vm0, %v9295_v1 }
0x1231   :  { %8792 = vmatprep.subr.bf16.mxu0 %v9293_v0 }
0x1234   :  { %8794 = vmatpush3.bf16.msra.mxu0 %v9638_v34 }
0x1235   :  { %8795 = vmatprep.subr.bf16.mxu0 %v9293_v0 }
0x1237   :  { %8191 = vmatmul.mubr.f32.vlgmr.msra.gmra.mrb[8].mxu0 %v4324_v8 }
0x1238   :  { %8797 = vmatpush3.bf16.msra.mxu0 %v9651_v47  ;;  %8201 = vmatprep.mubr.msk.f32.mxu0 %vm9294_vm0, %v9295_v1 }
0x1239   :  { %8798 = vmatprep.subr.bf16.mxu0 %v9293_v0 }
0x123c   :  { %8800 = vmatpush3.bf16.msra.mxu0 %v9660_v48 }
0x123d   :  { %8801 = vmatprep.subr.bf16.mxu0 %v9293_v0 }
0x123f   :  { %8202 = vmatmul.mubr.f32.vlgmr.msra.gmra.mrb[8].mxu0 %v4325_v9 }
0x1240   :  { %8803 = vmatpush3.bf16.msra.mxu0 %v9597_v36  ;;  %8212 = vmatprep.mubr.msk.f32.mxu0 %vm9294_vm0, %v9295_v1 }
0x1241   :  { %8804 = vmatprep.subr.bf16.mxu0 %v9293_v0 }
0x1244   :  { %8806 = vmatpush3.bf16.msra.mxu0 %v9617_v41 }
0x1245   :  { %8807 = vmatprep.subr.bf16.mxu0 %v9293_v0 }
0x1247   :  { %8213 = vmatmul.mubr.f32.vlgmr.msra.gmra.mrb[8].mxu0 %v4326_v10 }
0x1248   :  { %8809 = vmatpush3.bf16.msra.mxu0 %v9678_v49  ;;  %8223 = vmatprep.mubr.msk.f32.mxu0 %vm9294_vm0, %v9295_v1 }
0x1249   :  { %8810 = vmatprep.subr.bf16.mxu0 %v9293_v0 }
0x124c   :  { %8812 = vmatpush3.bf16.msra.mxu0 %v9683_v50 }
0x124d   :  { %8813 = vmatprep.subr.bf16.mxu0 %v9293_v0 }
0x124f   :  { %8224 = vmatmul.mubr.f32.vlgmr.msra.gmra.mrb[8].mxu0 %v4324_v8 }
0x1250   :  { %8815 = vmatpush3.bf16.msra.mxu0 %v9597_v36  ;;  %8234 = vmatprep.mubr.msk.f32.mxu0 %vm9294_vm0, %v9295_v1 }
0x1251   :  { %8816 = vmatprep.subr.bf16.mxu0 %v9293_v0 }
0x1254   :  { %8818 = vmatpush3.bf16.msra.mxu0 %v9617_v41 }
0x1255   :  { %8303 = vmatprep.subr.mxu0 %v9295_v1 }
0x1257   :  { %8235 = vmatmul.mubr.f32.vlgmr.msra.gmra.mrb[8].mxu0 %v4324_v8 }
0x1258   :  { %8305 = vmatprep.mubr.msk.f32.mxu0 %vm9294_vm0, %v9295_v1 }
0x125d   :  { %8304 = vmatpush3.xpose.msra.mxu0 %v10009_v28 }
0x125e   :  { %8308 = vmatprep.subr.mxu0 %v9295_v1 }
0x132a   :  { %v4736_v29 = vpop.f32.mrb[8].mxu0 }
0x132b   :  { %v4750_v30 = vadd.f32 %v4736_v29, %v9706_v55  ;;  %v8236_v14 = vpop.f32.mrb[9].mxu0  ;;  %v4741_v22 = vrot.slane %v4736_v29, 2 }
0x132c   :  { %v5394_v14 = vand.u32 4294901760, %v5393_v20 }
0x132d   :  { %v4752_v15 = vrot.slane %v4750_v30, 2  ;;  %v4743_v23 = vadd.f32 %v9713_v60, %v4741_v22 }
0x132e   :  { %v5395_v4 = vsub.f32 %v5393_v20, %v5394_v14 }
0x132f   :  { %4753 = vrot.lane.b32.xlu1 %v4752_v15, %s9296_s29  ;;  %v7256_v16 = vmul.f32 -1.442695, %v4743_v23 }
0x1331   :  { %9101 = vpow2.f32 %v7256_v16  ;;  %v5396_v16 = vand.u32 4294901760, %v5395_v4  ;;  %v10171_v4 = vld [vmem:[#allocation11 + $0x10] sm:$0xff] }
0x133b   :  { %v9102_v18 = vpop.eup %9101 }
0x133c   :  { %v4747_v24 = vadd.f32 1.0, %v9102_v18 }
0x133e   :  { %9103 = vrcp.f32 %v4747_v24 }
0x1348   :  { %v9104_v26 = vpop.eup %9103 }
0x1349   :  { %v4763_v37 = vsub.f32 1.0, %v9104_v26  ;;  %v4771_v39 = vmul.f32 %v9104_v26, %v4769_v13 }
0x13a1   :  { %v4754_v27 = vpop.permute.xlu1 %4753 }
0x13a2   :  { %v4756_v31 = vmul.f32 %v9104_v26, %v4754_v27 }
0x13a4   :  { %4758 = vrot.lane.b32.xlu0 %v4756_v31, %s9296_s29 }
0x1416   :  { %v4759_v32 = vpop.permute.xlu0 %4758 }
0x1417   :  { %v4761_v33 = vadd.f32 %v9713_v60, %v4759_v32 }
0x1419   :  { %9105 = vtanh.f32 %v4761_v33 }
0x1423   :  { %v9106_v35 = vpop.eup %9105 }
0x1424   :  { %4765 = vrot.lane.b32.xlu1 %v9106_v35, %s9297_s10 }
0x1496   :  { %v4766_v38 = vpop.permute.xlu1 %4765 }
0x1497   :  { %v4768_v40 = vmul.f32 %v4766_v38, %v4763_v37 }
0x1499   :  { %v10020_v21 = vadd.f32 %v4771_v39, %v4768_v40 }
0x149b   :  { %v4774_v42 = vrot.slane %v10020_v21, 6  ;;  %v5293_v6 = vrot.slane %v10020_v21, 7  ;;  %v5298_v10 = vrot.slane %v10020_v21, 5 }
0x149d   :  { %4775 = vrot.lane.b32.xlu0 %v4774_v42, %s9297_s10  ;;  %v5304_v17 = vsel %vm5303_vm3, %v4250_v5, %v5298_v10 }
0x150f   :  { %v4776_v43 = vpop.permute.xlu0 %4775 }
0x1510   :  { %v4777_v44 = vsel %vm120_vm1, %v4776_v43, 0 }
0x1511   :  { %v4848_v45 = vand.u32 4294901760, %v4777_v44 }
0x1513   :  { %v4849_v46 = vsub.f32 %v4777_v44, %v4848_v45 }
0x1515   :  { %v4850_v52 = vand.u32 4294901760, %v4849_v46 }
0x1517   :  { %v4851_v53 = vsub.f32 %v4849_v46, %v4850_v52 }
0x1519   :  { %v4852_v54 = vand.u32 4294901760, %v4851_v53  ;;  %v6231_v53 = vld [vmem:[#allocation11 + $0x28] sm:$0xff] }
0x151b   :  { %8246 = vmatmul.mubr.f32.vlgmr.msra.gmra.mrb[8].mxu1 %v4852_v54 }
0x151c   :  { %8827 = vmatpush3.bf16.msra.mxu1 %v9631_v19  ;;  %8256 = vmatprep.mubr.msk.f32.mxu1 %vm9294_vm0, %v9295_v1  ;;  %v10054_v19 = vsel %vm5777_vm2, %v9999_v51, 0 }
0x151d   :  { %8828 = vmatprep.subr.bf16.mxu1 %v9293_v0 }
0x1520   :  { %8830 = vmatpush3.bf16.msra.mxu1 %v9638_v34  ;;  %v10059_v34 = vand.u32 4294901760, %v10054_v19 }
0x1521   :  { %8831 = vmatprep.subr.bf16.mxu1 %v9293_v0 }
0x1522   :  { %v5858_v13 = vsub.f32 %v10054_v19, %v10059_v34  ;;  %v6241_v19 = vand.u32 4294901760, %v6231_v53 }
0x1523   :  { %8257 = vmatmul.mubr.f32.vlgmr.msra.gmra.mrb[8].mxu1 %v4848_v45 }
0x1524   :  { %8833 = vmatpush3.bf16.msra.mxu1 %v9651_v47  ;;  %8267 = vmatprep.mubr.msk.f32.mxu1 %vm9294_vm0, %v9295_v1  ;;  %v5859_v40 = vand.u32 4294901760, %v5858_v13 }
0x1525   :  { %8834 = vmatprep.subr.bf16.mxu1 %v9293_v0 }
0x1526   :  { %v5860_v43 = vsub.f32 %v5858_v13, %v5859_v40 }
0x1528   :  { %8836 = vmatpush3.bf16.msra.mxu1 %v9660_v48 }
0x1529   :  { %8837 = vmatprep.subr.bf16.mxu1 %v9293_v0 }
0x152b   :  { %8268 = vmatmul.mubr.f32.vlgmr.msra.gmra.mrb[8].mxu1 %v4849_v46  ;;  %v5861_v46 = vand.u32 4294901760, %v5860_v43 }
0x152c   :  { %8839 = vmatpush3.bf16.msra.mxu1 %v9597_v36  ;;  %8278 = vmatprep.mubr.msk.f32.mxu1 %vm9294_vm0, %v9295_v1 }
0x152d   :  { %8840 = vmatprep.subr.bf16.mxu1 %v9293_v0 }
0x1530   :  { %8842 = vmatpush3.bf16.msra.mxu1 %v9617_v41 }
0x1531   :  { %8843 = vmatprep.subr.bf16.mxu1 %v9293_v0 }
0x1533   :  { %8279 = vmatmul.mubr.f32.vlgmr.msra.gmra.mrb[8].mxu1 %v4850_v52  ;;  %v6230_v52 = vld [vmem:[#allocation11 + $0x20] sm:$0xff] }
0x1534   :  { %8845 = vmatpush3.bf16.msra.mxu1 %v9678_v49  ;;  %8289 = vmatprep.mubr.msk.f32.mxu1 %vm9294_vm0, %v9295_v1  ;;  %v6238_v54 = vand.u32 4294901760, %v6230_v52 }
0x1535   :  { %8846 = vmatprep.subr.bf16.mxu1 %v9293_v0 }
0x1538   :  { %8848 = vmatpush3.bf16.msra.mxu1 %v9683_v50 }
0x1539   :  { %8849 = vmatprep.subr.bf16.mxu1 %v9293_v0 }
0x153b   :  { %8290 = vmatmul.mubr.f32.vlgmr.msra.gmra.mrb[8].mxu1 %v4848_v45 }
0x153c   :  { %8851 = vmatpush3.bf16.msra.mxu1 %v9597_v36  ;;  %8300 = vmatprep.mubr.msk.f32.mxu1 %vm9294_vm0, %v9295_v1 }
0x153d   :  { %8852 = vmatprep.subr.bf16.mxu1 %v9293_v0 }
0x1540   :  { %8854 = vmatpush3.bf16.msra.mxu1 %v9617_v41 }
0x1541   :  { %8333 = vmatprep.subr.mxu1 %v9295_v1 }
0x1543   :  { %8301 = vmatmul.mubr.f32.vlgmr.msra.gmra.mrb[8].mxu1 %v4848_v45 }
0x1544   :  { %8334 = vmatpush3.msra.mxu1 %v10059_v34  ;;  %8335 = vmatprep.mubr.msk.f32.mxu1 %vm9294_vm0, %v9295_v1 }
0x1545   :  { %8338 = vmatprep.subr.mxu1 %v9295_v1 }
0x1616   :  { %v5260_v36 = vpop.f32.mrb[8].mxu1 }
0x1617   :  { %v5274_v47 = vadd.f32 %v5260_v36, %v9706_v55  ;;  %v8302_v48 = vpop.f32.mrb[9].mxu1  ;;  %v5265_v41 = vrot.slane %v5260_v36, 1  ;;  %v10128_v36 = vsub.f32 %v6230_v52, %v6238_v54 }
0x1619   :  { %v5276_v49 = vrot.slane %v5274_v47, 1  ;;  %v5267_v50 = vadd.f32 %v9713_v60, %v5265_v41  ;;  %v10130_v47 = vsub.f32 %v6231_v53, %v6241_v19  ;;  %v6319_v48 = vand.u32 4294901760, %v10128_v36 }
0x161b   :  { %5277 = vrot.lane.b32.xlu1 %v5276_v49, %s9296_s29  ;;  %v7257_v56 = vmul.f32 -1.442695, %v5267_v50  ;;  %v6326_v49 = vand.u32 4294901760, %v10130_v47  ;;  %v6320_v41 = vsub.f32 %v10128_v36, %v6319_v48 }
0x161d   :  { %9107 = vpow2.f32 %v7257_v56  ;;  %v6327_v50 = vsub.f32 %v10130_v47, %v6326_v49  ;;  %v6321_v56 = vand.u32 4294901760, %v6320_v41 }
0x1627   :  { %v9108_v57 = vpop.eup %9107 }
0x1628   :  { %v5271_v58 = vadd.f32 1.0, %v9108_v57  ;;  %v6328_v57 = vand.u32 4294901760, %v6327_v50 }
0x162a   :  { %9109 = vrcp.f32 %v5271_v58  ;;  %v8862_v58 = vpack.c.bf16 %v6328_v57, %v6321_v56 }
0x1634   :  { %v9110_v59 = vpop.eup %9109 }
0x1635   :  { %v5287_v3 = vsub.f32 1.0, %v9110_v59  ;;  %v5295_v8 = vmul.f32 %v9110_v59, %v5293_v6 }
0x168d   :  { %v5278_v61 = vpop.permute.xlu1 %5277 }
0x168e   :  { %v5280_v62 = vmul.f32 %v9110_v59, %v5278_v61  ;;  %v6232_v59 = vld [vmem:[#allocation11 + $0x30] sm:$0xff]  ;;  %v6233_v61 = vld [vmem:[#allocation11 + $0x38] sm:$0xff] }
0x1690   :  { %5282 = vrot.lane.b32.xlu0 %v5280_v62, %s9296_s29  ;;  %v6244_v62 = vand.u32 4294901760, %v6232_v59 }
0x1702   :  { %v5283_v63 = vpop.permute.xlu0 %5282 }
0x1703   :  { %v5285_v55 = vadd.f32 %v9713_v60, %v5283_v63  ;;  %v6247_v63 = vand.u32 4294901760, %v6233_v61 }
0x1705   :  { %9111 = vtanh.f32 %v5285_v55  ;;  %v10152_v55 = vsub.f32 %v6233_v61, %v6247_v63 }
0x170f   :  { %v9112_v2 = vpop.eup %9111 }
0x1710   :  { %5289 = vrot.lane.b32.xlu1 %v9112_v2, %s9297_s10 }
0x1782   :  { %v5290_v7 = vpop.permute.xlu1 %5289 }
0x1783   :  { %v5292_v9 = vmul.f32 %v5290_v7, %v5287_v3  ;;  %v6340_v3 = vand.u32 4294901760, %v10152_v55 }
0x1785   :  { %v5296_v11 = vadd.f32 %v5295_v8, %v5292_v9  ;;  %v6341_v7 = vsub.f32 %v10152_v55, %v6340_v3 }
0x1787   :  { %v5301_v12 = vrot.slane %v5296_v11, 5  ;;  %v6342_v9 = vand.u32 4294901760, %v6341_v7  ;;  %v8856_v11 = vpack.c.bf16 %v6241_v19, %v6238_v54  ;;  %v8880_v19 = vpack.c.bf16 %v6326_v49, %v6319_v48 }
0x1789   :  { %v5306_v60 = vsel %vm5305_vm4, %v5304_v17, %v5301_v12  ;;  %v8859_v12 = vpack.c.bf16 %v6247_v63, %v6244_v62 }
0x178a   :  { %5308 = vrot.lane.b32.xlu0 %v5306_v60, %s9297_s10 }
0x17fc   :  { %v5309_v51 = vpop.permute.xlu0 %5308 }
0x17fd   :  { %v5310_v29 = vsel %vm120_vm1, %v5309_v51, 0  ;;  %v10167_v51 = vld [vmem:[#allocation11 + $0x8] sm:$0xff] }
0x17fe   :  { %v10079_v30 = vand.u32 4294901760, %v5310_v29 }
0x1800   :  { %v10082_v15 = vsub.f32 %v5310_v29, %v10079_v30 }
0x1802   :  { %v10085_v22 = vand.u32 4294901760, %v10082_v15 }
0x1804   :  { %v5384_v5 = vsub.f32 %v10082_v15, %v10085_v22 }
0x1806   :  { %v10089_v23 = vand.u32 4294901760, %v5384_v5  ;;  %v10173_v5 = vld [vmem:[#allocation11 + $0x18] sm:$0xff] }
0x1808   :  { %8306 = vmatmul.mubr.f32.vlgmr.msra.gmra.mrb[10].mxu0 %v10089_v23 }
0x1809   :  { %8309 = vmatpush3.xpose.msra.mxu0 %v5396_v16  ;;  %8310 = vmatprep.mubr.msk.f32.mxu0 %vm9294_vm0, %v9295_v1 }
0x180a   :  { %8313 = vmatprep.subr.mxu0 %v9295_v1 }
0x1810   :  { %8311 = vmatmul.mubr.f32.vlgmr.msra.gmra.mrb[10].mxu0 %v10079_v30 }
0x1811   :  { %8314 = vmatpush3.xpose.msra.mxu0 %v5393_v20  ;;  %8315 = vmatprep.mubr.msk.f32.mxu0 %vm9294_vm0, %v9295_v1  ;;  %v10165_v20 = vld [vmem:[#allocation11] sm:$0xff] }
0x1812   :  { %8318 = vmatprep.subr.mxu0 %v9295_v1  ;;  %v6723_v29 = vand.u32 4294901760, %v10165_v20 }
0x1818   :  { %8316 = vmatmul.mubr.f32.vlgmr.msra.gmra.mrb[10].mxu0 %v10082_v15 }
0x1819   :  { %8319 = vmatpush3.xpose.msra.mxu0 %v10009_v28  ;;  %8320 = vmatprep.mubr.msk.f32.mxu0 %vm9294_vm0, %v9295_v1 }
0x181a   :  { %8323 = vmatprep.subr.mxu0 %v9295_v1 }
0x1820   :  { %8321 = vmatmul.mubr.f32.vlgmr.msra.gmra.mrb[10].mxu0 %v10085_v22 }
0x1821   :  { %8324 = vmatpush3.xpose.msra.mxu0 %v5394_v14  ;;  %8325 = vmatprep.mubr.msk.f32.mxu0 %vm9294_vm0, %v9295_v1  ;;  %v6726_v14 = vand.u32 4294901760, %v10167_v51 }
0x1822   :  { %8328 = vmatprep.subr.mxu0 %v9295_v1 }
0x1828   :  { %8326 = vmatmul.mubr.f32.vlgmr.msra.gmra.mrb[10].mxu0 %v10079_v30 }
0x1829   :  { %8329 = vmatpush3.xpose.msra.mxu0 %v10009_v28  ;;  %8330 = vmatprep.mubr.msk.f32.mxu0 %vm9294_vm0, %v9295_v1 }
0x182a   :  { %8855 = vmatprep.subr.bf16.mxu0 %v9293_v0 }
0x1830   :  { %8331 = vmatmul.mubr.f32.vlgmr.msra.gmra.mrb[10].mxu0 %v10079_v30 }
0x1831   :  { %8371 = vmatprep.mubr.msk.f32.mxu0 %vm9294_vm0, %v9295_v1  ;;  %8857 = vmatpush3.bf16.msra.mxu0 %v8856_v11 }
0x1832   :  { %8858 = vmatprep.subr.bf16.mxu0 %v9293_v0 }
0x1835   :  { %8860 = vmatpush3.bf16.msra.mxu0 %v8859_v12 }
0x1836   :  { %8867 = vmatprep.subr.bf16.mxu0 %v9293_v0 }
0x1903   :  { %v5757_v25 = vpop.f32.mrb[10].mxu0 }
0x1904   :  { %v8332_v18 = vpop.f32.mrb[11].mxu0  ;;  %v5762_v24 = vsel %vm5761_vm5, %v5757_v25, -inf }
0x1905   :  { %5763 = vmax.xlane.f32.xlu1 %v5762_v24 }
0x1992   :  { %v5764_v26 = vpop.xlane.xlu1 %5763 }
0x1993   :  { %v5765_v27 = vsub.f32 %v5757_v25, %v5764_v26  ;;  %v10176_v25 = vsub.f32 %v10165_v20, %v6723_v29  ;;  %v10180_v26 = vsub.f32 %v10167_v51, %v6726_v14 }
0x1995   :  { %v5766_v31 = vmul.f32 1.442695, %v5765_v27  ;;  %v6729_v27 = vand.u32 4294901760, %v10171_v4  ;;  %v8904_v48 = vpack.c.bf16 %v10180_v26, %v10176_v25 }
0x1997   :  { %9113 = vpow2.f32 %v5766_v31  ;;  %v6732_v31 = vand.u32 4294901760, %v10173_v5 }
0x19a1   :  { %v9114_v28 = vpop.eup %9113 }
0x19a2   :  { %v5768_v32 = vsel %vm5761_vm5, %v9114_v28, 0.0 }
0x19a3   :  { %5769 = vadd.xlane.f32.xlu0 %v5768_v32 }
0x1a30   :  { %v5770_v33 = vpop.xlane.xlu0 %5769 }
0x1a31   :  { %9115 = vrcp.f32 %v5770_v33  ;;  %v6804_v33 = vand.u32 4294901760, %v10176_v25 }
0x1a3b   :  { %v9116_v35 = vpop.eup %9115 }
0x1a3c   :  { %v5772_v37 = vmul.f32 %v9116_v35, %v9114_v28  ;;  %v6811_v35 = vand.u32 4294901760, %v10180_v26 }
0x1a3e   :  { %v5775_v38 = vsel %vm5773_vm6, %v5772_v37, 0  ;;  %v10192_v37 = vsub.f32 %v10173_v5, %v6732_v31 }
0x1a3f   :  { %v5846_v39 = vand.u32 4294901760, %v5775_v38 }
0x1a41   :  { %v5847_v21 = vsub.f32 %v5775_v38, %v5846_v39 }
0x1a43   :  { %v5848_v42 = vand.u32 4294901760, %v5847_v21 }
0x1a45   :  { %v5849_v44 = vsub.f32 %v5847_v21, %v5848_v42 }
0x1a47   :  { %v5850_v45 = vand.u32 4294901760, %v5849_v44  ;;  %v6825_v44 = vand.u32 4294901760, %v10192_v37 }
0x1a49   :  { %8336 = vmatmul.mubr.f32.vlgmr.msra.gmra.mrb[10].mxu1 %v5850_v45  ;;  %v6826_v54 = vsub.f32 %v10192_v37, %v6825_v44 }
0x1a4a   :  { %8339 = vmatpush3.msra.mxu1 %v5861_v46  ;;  %8340 = vmatprep.mubr.msk.f32.mxu1 %vm9294_vm0, %v9295_v1 }
0x1a4b   :  { %8343 = vmatprep.subr.mxu1 %v9295_v1  ;;  %v6827_v56 = vand.u32 4294901760, %v6826_v54 }
0x1a51   :  { %8341 = vmatmul.mubr.f32.vlgmr.msra.gmra.mrb[10].mxu1 %v5846_v39 }
0x1a52   :  { %8344 = vmatpush3.msra.mxu1 %v5858_v13  ;;  %8345 = vmatprep.mubr.msk.f32.mxu1 %vm9294_vm0, %v9295_v1  ;;  %v10189_v13 = vsub.f32 %v10171_v4, %v6729_v27 }
0x1a53   :  { %8348 = vmatprep.subr.mxu1 %v9295_v1 }
0x1a54   :  { %v6818_v43 = vand.u32 4294901760, %v10189_v13  ;;  %v8907_v49 = vpack.c.bf16 %v10192_v37, %v10189_v13 }
0x1a56   :  { %v6819_v53 = vsub.f32 %v10189_v13, %v6818_v43 }
0x1a58   :  { %v6820_v50 = vand.u32 4294901760, %v6819_v53 }
0x1a59   :  { %8346 = vmatmul.mubr.f32.vlgmr.msra.gmra.mrb[10].mxu1 %v5847_v21  ;;  %v6805_v21 = vsub.f32 %v10176_v25, %v6804_v33 }
0x1a5a   :  { %8349 = vmatpush3.msra.mxu1 %v10059_v34  ;;  %8350 = vmatprep.mubr.msk.f32.mxu1 %vm9294_vm0, %v9295_v1  ;;  %v8901_v57 = vpack.c.bf16 %v6827_v56, %v6820_v50 }
0x1a5b   :  { %8353 = vmatprep.subr.mxu1 %v9295_v1  ;;  %v6806_v46 = vand.u32 4294901760, %v6805_v21 }
0x1a61   :  { %8351 = vmatmul.mubr.f32.vlgmr.msra.gmra.mrb[10].mxu1 %v5848_v42  ;;  %v6812_v42 = vsub.f32 %v10180_v26, %v6811_v35 }
0x1a62   :  { %8354 = vmatpush3.msra.mxu1 %v5859_v40  ;;  %8355 = vmatprep.mubr.msk.f32.mxu1 %vm9294_vm0, %v9295_v1  ;;  %v8868_v40 = vpack.c.bf16 %v10130_v47, %v10128_v36  ;;  %v8892_v36 = vpack.c.bf16 %v6726_v14, %v6723_v29  ;;  %v8895_v47 = vpack.c.bf16 %v6732_v31, %v6729_v27  ;;  %v7258_v31 = vld [vmem:[%s10291_s7] ss:$0 sm:$0xff]  ;;  %s9253_s7 = scalar_lea.vmem %s7237_s15, 64 }
0x1a63   :  { %8358 = vmatprep.subr.mxu1 %v9295_v1  ;;  %v6813_v52 = vand.u32 4294901760, %v6812_v42  ;;  %p9254_p6 = scmp.ne.s32.totalorder %s7237_s15, %s9253_s7  ;;  %p9259_p8 = scmp.lt.s32.totalorder %s9253_s7, %s9253_s7 }
0x1a65   :  { %v8898_v41 = vpack.c.bf16 %v6813_v52, %v6806_v46  ;;  %p9260_p9 = por %p9259_p8, %p9258_p7 }
0x1a67   :  { %p9261_p10 = pnand %p9260_p9, %p9254_p6 }
0x1a69   :  { %8356 = vmatmul.mubr.f32.vlgmr.msra.gmra.mrb[10].mxu1 %v5846_v39 }
0x1a6a   :  { %8359 = vmatpush3.msra.mxu1 %v10059_v34  ;;  %8360 = vmatprep.mubr.msk.f32.mxu1 %vm9294_vm0, %v9295_v1  ;;  %v10150_v34 = vsub.f32 %v6232_v59, %v6244_v62 }
0x1a6b   :  { %8861 = vmatprep.subr.bf16.mxu1 %v9293_v0 }
0x1a6c   :  { %v6333_v2 = vand.u32 4294901760, %v10150_v34  ;;  %v8871_v17 = vpack.c.bf16 %v10152_v55, %v10150_v34 }
0x1a6e   :  { %v6334_v6 = vsub.f32 %v10150_v34, %v6333_v2  ;;  %v10163_v60 = vpack.c.bf16 %v6340_v3, %v6333_v2 }
0x1a70   :  { %v6335_v8 = vand.u32 4294901760, %v6334_v6 }
0x1a71   :  { %8361 = vmatmul.mubr.f32.vlgmr.msra.gmra.mrb[10].mxu1 %v5846_v39 }
0x1a72   :  { %8863 = vmatpush3.bf16.msra.mxu1 %v8862_v58  ;;  %8382 = vmatprep.mubr.msk.f32.mxu1 %vm9294_vm0, %v9295_v1  ;;  %v8865_v10 = vpack.c.bf16 %v6342_v9, %v6335_v8 }
0x1a73   :  { %8864 = vmatprep.subr.bf16.mxu1 %v9293_v0 }
0x1a76   :  { %8866 = vmatpush3.bf16.msra.mxu1 %v8865_v10 }
0x1a77   :  { %8873 = vmatprep.subr.bf16.mxu1 %v9293_v0 }
0x1b44   :  { %v6222_v16 = vpop.f32.mrb[10].mxu1 }
0x1b45   :  { %v6235_v18 = vsel %vm120_vm1, %v6222_v16, 0  ;;  %v8362_v24 = vpop.f32.mrb[11].mxu1 }
0x1b46   :  { %v6306_v28 = vand.u32 4294901760, %v6235_v18 }
0x1b48   :  { %v6307_v32 = vsub.f32 %v6235_v18, %v6306_v28  ;;  %8383 = vmatmul.mubr.f32.vlgmr.msra.gmra.mrb[12].mxu1 %v6306_v28 }
0x1b49   :  { %8875 = vmatpush3.bf16.msra.mxu1 %v8856_v11  ;;  %8404 = vmatprep.mubr.msk.f32.mxu1 %vm9294_vm0, %v9295_v1 }
0x1b4a   :  { %v6308_v38 = vand.u32 4294901760, %v6307_v32  ;;  %8876 = vmatprep.subr.bf16.mxu1 %v9293_v0 }
0x1b4c   :  { %v6309_v39 = vsub.f32 %v6307_v32, %v6308_v38 }
0x1b4d   :  { %8878 = vmatpush3.bf16.msra.mxu1 %v8859_v12 }
0x1b4e   :  { %v6310_v45 = vand.u32 4294901760, %v6309_v39  ;;  %8885 = vmatprep.subr.bf16.mxu1 %v9293_v0 }
0x1b50   :  { %8405 = vmatmul.mubr.f32.vlgmr.msra.gmra.mrb[14].mxu1 %v6308_v38  ;;  %8372 = vmatmul.mubr.f32.vlgmr.msra.gmra.mrb[12].mxu0 %v6310_v45 }
0x1b51   :  { %8869 = vmatpush3.bf16.msra.mxu0 %v8868_v40  ;;  %8887 = vmatpush3.bf16.msra.mxu1 %v8856_v11 }
0x1b52   :  { %8870 = vmatprep.subr.bf16.mxu0 %v9293_v0  ;;  %8888 = vmatprep.subr.bf16.mxu1 %v9293_v0 }
0x1b53   :  { %8393 = vmatprep.mubr.msk.f32.mxu0 %vm9294_vm0, %v9295_v1  ;;  %8426 = vmatprep.mubr.msk.f32.mxu1 %vm9294_vm0, %v9295_v1 }
0x1b55   :  { %8872 = vmatpush3.bf16.msra.mxu0 %v8871_v17  ;;  %8890 = vmatpush3.bf16.msra.mxu1 %v8859_v12 }
0x1b56   :  { %8879 = vmatprep.subr.bf16.mxu0 %v9293_v0  ;;  %8897 = vmatprep.subr.bf16.mxu1 %v9293_v0 }
0x1b58   :  { %8394 = vmatmul.mubr.f32.vlgmr.msra.gmra.mrb[14].mxu0 %v6307_v32  ;;  %8427 = vmatmul.mubr.f32.vlgmr.msra.gmra.mrb[16].mxu1 %v6306_v28 }
0x1b59   :  { %8881 = vmatpush3.bf16.msra.mxu0 %v8880_v19  ;;  %8899 = vmatpush3.bf16.msra.mxu1 %v8898_v41 }
0x1b5a   :  { %8882 = vmatprep.subr.bf16.mxu0 %v9293_v0  ;;  %8900 = vmatprep.subr.bf16.mxu1 %v9293_v0 }
0x1b5b   :  { %8415 = vmatprep.mubr.msk.f32.mxu0 %vm9294_vm0, %v9295_v1  ;;  %8448 = vmatprep.mubr.msk.f32.mxu1 %vm9294_vm0, %v9295_v1 }
0x1b5d   :  { %8884 = vmatpush3.bf16.msra.mxu0 %v10163_v60  ;;  %8902 = vmatpush3.bf16.msra.mxu1 %v8901_v57 }
0x1b5e   :  { %8891 = vmatprep.subr.bf16.mxu0 %v9293_v0  ;;  %8909 = vmatprep.subr.bf16.mxu1 %v9293_v0 }
0x1b60   :  { %8416 = vmatmul.mubr.f32.vlgmr.msra.gmra.mrb[16].mxu0 %v6306_v28  ;;  %8449 = vmatmul.mubr.f32.vlgmr.msra.gmra.mrb[18].mxu1 %v10079_v30 }
0x1b61   :  { %8893 = vmatpush3.bf16.msra.mxu0 %v8892_v36  ;;  %8911 = vmatpush3.bf16.msra.mxu1 %v8892_v36 }
0x1b62   :  { %8894 = vmatprep.subr.bf16.mxu0 %v9293_v0  ;;  %8912 = vmatprep.subr.bf16.mxu1 %v9293_v0 }
0x1b63   :  { %8437 = vmatprep.mubr.msk.f32.mxu0 %vm9294_vm0, %v9295_v1  ;;  %8470 = vmatprep.mubr.msk.f32.mxu1 %vm9294_vm0, %v9295_v1 }
0x1b65   :  { %8896 = vmatpush3.bf16.msra.mxu0 %v8895_v47  ;;  %8914 = vmatpush3.bf16.msra.mxu1 %v8895_v47 }
0x1b66   :  { %8903 = vmatprep.subr.bf16.mxu0 %v9293_v0  ;;  %8921 = vmatprep.subr.bf16.mxu1 %v9293_v0 }
0x1b68   :  { %8438 = vmatmul.mubr.f32.vlgmr.msra.gmra.mrb[18].mxu0 %v10089_v23  ;;  %8471 = vmatmul.mubr.f32.vlgmr.msra.gmra.mrb[20].mxu1 %v10085_v22  ;;  %v8916_v22 = vpack.c.bf16 %v6811_v35, %v6804_v33  ;;  %v8919_v23 = vpack.c.bf16 %v6825_v44, %v6818_v43 }
0x1b69   :  { %8905 = vmatpush3.bf16.msra.mxu0 %v8904_v48  ;;  %8923 = vmatpush3.bf16.msra.mxu1 %v8892_v36 }
0x1b6a   :  { %8906 = vmatprep.subr.bf16.mxu0 %v9293_v0  ;;  %8924 = vmatprep.subr.bf16.mxu1 %v9293_v0 }
0x1b6b   :  { %8459 = vmatprep.mubr.msk.f32.mxu0 %vm9294_vm0, %v9295_v1  ;;  %8492 = vmatprep.mubr.msk.f32.mxu1 %vm9294_vm0, %v9295_v1 }
0x1b6d   :  { %8908 = vmatpush3.bf16.msra.mxu0 %v8907_v49  ;;  %8926 = vmatpush3.bf16.msra.mxu1 %v8895_v47 }
0x1b6e   :  { %8915 = vmatprep.subr.bf16.mxu0 %v9293_v0 }
0x1b70   :  { %8460 = vmatmul.mubr.f32.vlgmr.msra.gmra.mrb[20].mxu0 %v10082_v15  ;;  %8493 = vmatmul.mubr.f32.vlgmr.msra.gmra.mrb[22].mxu1 %v10079_v30 }
0x1b71   :  { %8917 = vmatpush3.bf16.msra.mxu0 %v8916_v22  ;;  %8481 = vmatprep.mubr.msk.f32.mxu0 %vm9294_vm0, %v9295_v1 }
0x1b72   :  { %8918 = vmatprep.subr.bf16.mxu0 %v9293_v0 }
0x1b75   :  { %8920 = vmatpush3.bf16.msra.mxu0 %v8919_v23 }
0x1b78   :  { %8482 = vmatmul.mubr.f32.vlgmr.msra.gmra.mrb[22].mxu0 %v10079_v30 }
0x1c1b   :  { %v6403_v58 = vpop.f32.mrb[12].mxu1 }
0x1c1c   :  { %v8384_v59 = vpop.f32.mrb[13].mxu1 }
0x1c23   :  { %v6560_v61 = vpop.f32.mrb[14].mxu1  ;;  %v6312_v15 = vpop.f32.mrb[12].mxu0 }
0x1c24   :  { %v6404_v62 = vadd.f32 %v6403_v58, %v6312_v15  ;;  %v8406_v63 = vpop.f32.mrb[15].mxu1  ;;  %v8373_v34 = vpop.f32.mrb[13].mxu0 }
0x1c2b   :  { %v6483_v55 = vpop.f32.mrb[14].mxu0  ;;  %v6718_v2 = vpop.f32.mrb[16].mxu1 }
0x1c2c   :  { %v6484_v3 = vadd.f32 %v6483_v55, %v6404_v62  ;;  %v8395_v6 = vpop.f32.mrb[15].mxu0  ;;  %v8428_v7 = vpop.f32.mrb[17].mxu1 }
0x1c2e   :  { %v6561_v8 = vadd.f32 %v6560_v61, %v6484_v3 }
0x1c33   :  { %v6643_v9 = vpop.f32.mrb[16].mxu0  ;;  %v6888_v1 = vpop.f32.mrb[18].mxu1 }
0x1c34   :  { %v6644_v10 = vadd.f32 %v6643_v9, %v6561_v8  ;;  %v8417_v0 = vpop.f32.mrb[17].mxu0  ;;  %v8450_v11 = vpop.f32.mrb[19].mxu1 }
0x1c36   :  { %v6719_v12 = vadd.f32 %v6718_v2, %v6644_v10 }
0x1c3b   :  { %v6797_v30 = vpop.f32.mrb[18].mxu0  ;;  %v7045_v17 = vpop.f32.mrb[20].mxu1 }
0x1c3c   :  { %v6798_v60 = vadd.f32 %v6797_v30, %v6719_v12  ;;  %v8439_v20 = vpop.f32.mrb[19].mxu0  ;;  %v8472_v51 = vpop.f32.mrb[21].mxu1 }
0x1c3e   :  { %v6889_v29 = vadd.f32 %v6888_v1, %v6798_v60 }
0x1c43   :  { %v6968_v14 = vpop.f32.mrb[20].mxu0  ;;  %v7203_v4 = vpop.f32.mrb[22].mxu1 }
0x1c44   :  { %v6969_v5 = vadd.f32 %v6968_v14, %v6889_v29  ;;  %v8461_v16 = vpop.f32.mrb[21].mxu0  ;;  %v8494_v25 = vpop.f32.mrb[23].mxu1 }
0x1c46   :  { %v7046_v18 = vadd.f32 %v7045_v17, %v6969_v5 }
0x1c4b   :  { %v7128_v24 = vpop.f32.mrb[22].mxu0 }
0x1c4c   :  { %v7129_v26 = vadd.f32 %v7128_v24, %v7046_v18  ;;  %v8483_v27 = vpop.f32.mrb[23].mxu0 }
0x1c4e   :  { %v7204_v28 = vadd.f32 %v7203_v4, %v7129_v26 }
0x1c50   :  { %v7214_v32 = vadd.f32 %v7258_v31, %v7204_v28 }
0x1c52   :  { %v7216_v33 = vsel %vm7215_vm7, %v7214_v32, -inf }
0x1c53   :  { %7217 = vmax.xlane.f32.xlu0 %v7216_v33 }
0x1ce0   :  { %v7218_v35 = vpop.xlane.xlu0 %7217 }
0x1ce1   :  { %v7219_v13 = vsub.f32 %v7214_v32, %v7218_v35 }
0x1ce3   :  { %v7220_v37 = vmul.f32 1.442695, %v7219_v13 }
0x1ce5   :  { %9117 = vpow2.f32 %v7220_v37 }
0x1cef   :  { %v9118_v38 = vpop.eup %9117 }
0x1cf0   :  { %v7222_v39 = vsel %vm7215_vm7, %v9118_v38, 0.0 }
0x1cf1   :  { %7223 = vadd.xlane.f32.xlu1 %v7222_v39 }
0x1d7e   :  { %v7224_v40 = vpop.xlane.xlu1 %7223 }
0x1d7f   :  { %9119 = vlog2.f32 %v7224_v40 }
0x1d89   :  { %v9120_v21 = vpop.eup %9119 }
0x1d8a   :  { %v7226_v42 = vmul.f32 0.6931472, %v9120_v21 }
0x1d8c   :  { %v7227_v43 = vadd.f32 %v7226_v42, %v7218_v35 }
0x1d8e   :  { %v7228_v44 = vsub.f32 %v7214_v32, %v7227_v43 }
0x1d90   :  { %7229 = vst [vmem:[#allocation13] sm:$0x7] %v7228_v44 }
0x1d91   :  { %9264 = shalt.err (!%p9261_p10)
}
0x1d92   :  { %s9265_s3 = scalar_lea.hbm %s10292_s8, 64 }
0x1d93   :  { %p9266_p11 = scmp.ne.s32.totalorder %s10292_s8, %s9265_s3  ;;  %p9269_p12 = scmp.lt.u32.totalorder %s9265_s3, %s10292_s8 }
0x1d95   :  { %p9271_p13 = pnand %p9269_p12, %p9266_p11 }
0x1d97   :  { %9274 = shalt.err (!%p9271_p13)
}
0x1d98   :  { %7239 = dma.vmem_to_hbm [thread:$0]  %s7237_s15, 64, %s10292_s8, [#allocation4]  }
0x1d99   :  { %9283 = dma.done.wait [#allocation4], 64  }
0x1d9a   :  { %9284 = vsyncadd [#allocation4], 4294967232 }
0x1d9b   :  { %7243 = vsyncpa [#allocation3], 1 }
0x1d9c   :  { %7244 = vsyncpa [#allocation6], 1 }
0x1d9d   :  { %7245 = vsyncpa [#allocation9], 1 }
0x1d9e   :  { %7246 = vsyncpa [#allocation12], 1 }
0x1d9f   :  { %7247 = vsyncpa [#allocation4], 1 }

</bundles_post_ra>
